<compile_context>
chip_gen: v7x
topology: tpu7x:2x2x1
jax: 0.10.0
libtpu: 0.0.40
codegen_flags: <defaults>
</compile_context>

<pallas_src>
import jax
import jax.numpy as jnp
from jax.experimental import pallas as pl
from jax.experimental.pallas import tpu as pltpu

# Fixed module architecture (from the PyTorch spec) and data-time horizon.
SEQ_T = 8                         # sequence length the kernel is specialized to
H1, H2, H, OUT = 16, 8, 4, 2
G = 3 * H                         # fused GRU gate width [r|z|n] = 12
LANE = 128
OUTP = 128                        # lane-padded output width (lane-dense store)

# Packed weight-slab layout: (ROWS, WTOT) f32, all big blocks tile-aligned.
C_W1 = 0                          # (T*D<=128, T*H1=128) block-diag fc1, rows 0:128
C_W2 = 128                        # (T*H1=128, T*H2=64)  block-diag fc2, rows 0:128
C_WX = 256                        # (T*H2=64,  T*G=96)   block-diag [wir|wiz|win], rows 0:64
C_WH = 352                        # (H=4, G=12) fused hidden-side GRU [whr|whz|whn], rows 0:4
C_W3 = 256                        # (H=4, OUTP=128) lane-padded fc3, rows R_W3:R_W3+4
R_W3 = 64                         # fc3 weight rows (below the block-diag WX)
R_BIAS = 128                      # bias sublane: b1|b2|bx|bhn at their weight column offsets
R_B3 = 129                        # fc3 bias sublane (lane-padded to OUTP)
WTOT = 384                        # 3 lane tiles
ROWS = 136                        # 128 weight rows + 2 bias rows, padded to sublane multiple
XSLAB_COLS = 2 * LANE             # per-call slab: x in cols 0:T*D, lengths(f32) in col 128


def rnn_kernel(xs_ref, w_ref, out_ref):
    # xs_ref:  (Bp, 256) f32  -- cols 0:128 = x (row b = [x_{b,0,:},...,x_{b,T-1,:}]),
    #                            col 128 = lengths as f32
    # w_ref:   (ROWS, WTOT) f32 packed weight+bias slab (see layout above)
    # out_ref: (Bp, OUTP) f32 lane-dense output slab
    Bp = xs_ref.shape[0]

    # ---- per-call data: one lane-dense activation vreg + the lengths lane.
    x = xs_ref[:, 0:LANE]                                 # (Bp, 128)
    lens = xs_ref[:, LANE:LANE + 1]                       # (Bp, 1)

    # ---- static, tile-aligned slices of the packed slab (no full-slab load).
    w1 = w_ref[0:LANE, C_W1:C_W1 + SEQ_T * H1]            # (128, 128)
    w2 = w_ref[0:SEQ_T * H1, C_W2:C_W2 + SEQ_T * H2]      # (128, 64)
    wx = w_ref[0:SEQ_T * H2, C_WX:C_WX + SEQ_T * G]       # (64, 96)
    b1 = w_ref[R_BIAS:R_BIAS + 1, C_W1:C_W1 + SEQ_T * H1]
    b2 = w_ref[R_BIAS:R_BIAS + 1, C_W2:C_W2 + SEQ_T * H2]
    bx = w_ref[R_BIAS:R_BIAS + 1, C_WX:C_WX + SEQ_T * G]  # [b_ir+b_hr | b_iz+b_hz | b_in] x T
    bhn = w_ref[R_BIAS:R_BIAS + 1, C_WH:C_WH + H]         # (1, 4)  b_hn (inside the r gate)
    b3 = w_ref[R_B3:R_B3 + 1, C_W3:C_W3 + OUTP]           # (1, 128) lane-padded

    # ---- hoisted h-independent chain (all T steps at once, lane-dense slabs):
    #      fc1 -> tanh -> fc2 -> tanh -> input-side GRU projections + biases.
    x1 = jnp.tanh(jnp.dot(x, w1, preferred_element_type=jnp.float32) + b1)   # (Bp, 128)
    x2 = jnp.tanh(jnp.dot(x1, w2, preferred_element_type=jnp.float32) + b2)  # (Bp, 64)
    gx = jnp.dot(x2, wx, preferred_element_type=jnp.float32) + bx            # (Bp, 96)

    # Hoisted broadcasts (JAX does not CSE broadcast_in_dim inside the loop).
    wh_rows = [jnp.broadcast_to(w_ref[k:k + 1, C_WH:C_WH + G], (Bp, G))
               for k in range(H)]
    w3_rows = [jnp.broadcast_to(w_ref[R_W3 + k:R_W3 + k + 1, C_W3:C_W3 + OUTP], (Bp, OUTP))
               for k in range(H)]
    bhn_b = jnp.broadcast_to(bhn, (Bp, H))

    # ---- recurrent loop: fully unrolled (T static), only h-dependent work.
    h = jnp.zeros((Bp, H), jnp.float32)
    for t in range(SEQ_T):
        g = gx[:, t * G:(t + 1) * G]                      # (Bp, 12), h-independent slice
        # h @ [whr|whz|whn] on the VPU, balanced as a 2-level tree.
        hwh = ((h[:, 0:1] * wh_rows[0] + h[:, 1:2] * wh_rows[1]) +
               (h[:, 2:3] * wh_rows[2] + h[:, 3:4] * wh_rows[3]))
        rz = jax.nn.sigmoid(g[:, 0:2 * H] + hwh[:, 0:2 * H])                 # (Bp, 2H)
        r = rz[:, 0:H]
        z = rz[:, H:2 * H]
        n = jnp.tanh(g[:, 2 * H:3 * H] + r * (hwh[:, 2 * H:3 * H] + bhn_b))
        h_new = (1.0 - z) * n + z * h
        # freeze hidden state once the sequence has ended (packed-seq semantics)
        h = jnp.where(lens > float(t), h_new, h)

    # ---- fc3 + tanh on the VPU (no MXU round trip on the epilogue), lane-dense store.
    acc = ((h[:, 0:1] * w3_rows[0] + h[:, 1:2] * w3_rows[1]) +
           (h[:, 2:3] * w3_rows[2] + h[:, 3:4] * w3_rows[3]))
    out_ref[...] = jnp.tanh(acc + b3)


def pack_params(p, dim_input):
    """Pack all parameters (weights + biases) into ONE (ROWS, WTOT) slab.

    Called once per model; the block-diagonal copies make the in-kernel
    hoisted chain lane-dense (T time steps processed as one matmul each).
    """
    D = dim_input
    assert SEQ_T * D <= LANE, "kernel layout assumes T*dim_input <= 128"
    eye = jnp.eye(SEQ_T, dtype=jnp.float32)
    w1_bd = jnp.kron(eye, p["w1"])                                  # (T*D,  T*H1)
    w2_bd = jnp.kron(eye, p["w2"])                                  # (T*H1, T*H2)
    wx = jnp.concatenate([p["wir"], p["wiz"], p["win"]], axis=1)    # (H2, 3H)
    wx_bd = jnp.kron(eye, wx)                                       # (T*H2, T*G)
    wh = jnp.concatenate([p["whr"], p["whz"], p["whn"]], axis=1)    # (H, 3H)
    bx = jnp.concatenate([p["br"], p["bz"], p["bin"]], axis=1)      # (1, 3H)

    W = jnp.zeros((ROWS, WTOT), jnp.float32)
    W = W.at[0:SEQ_T * D, C_W1:C_W1 + SEQ_T * H1].set(w1_bd)
    W = W.at[0:SEQ_T * H1, C_W2:C_W2 + SEQ_T * H2].set(w2_bd)
    W = W.at[0:SEQ_T * H2, C_WX:C_WX + SEQ_T * G].set(wx_bd)
    W = W.at[0:H, C_WH:C_WH + G].set(wh)
    W = W.at[R_W3:R_W3 + H, C_W3:C_W3 + OUT].set(p["w3"])
    # bias sublanes
    W = W.at[R_BIAS, C_W1:C_W1 + SEQ_T * H1].set(jnp.tile(p["b1"], (1, SEQ_T))[0])
    W = W.at[R_BIAS, C_W2:C_W2 + SEQ_T * H2].set(jnp.tile(p["b2"], (1, SEQ_T))[0])
    W = W.at[R_BIAS, C_WX:C_WX + SEQ_T * G].set(jnp.tile(bx, (1, SEQ_T))[0])
    W = W.at[R_BIAS, C_WH:C_WH + H].set(p["bhn"][0])
    W = W.at[R_B3, C_W3:C_W3 + OUT].set(p["b3"][0])
    return W


def init_params(key, dim_input, h1=H1, h2=H2, hidden=H, out=OUT):
    ks = jax.random.split(key, 14)
    s = 0.1
    return {
        "w1":  jax.random.normal(ks[0], (dim_input, h1), jnp.float32) * s,
        "b1":  jax.random.normal(ks[1], (1, h1), jnp.float32) * s,
        "w2":  jax.random.normal(ks[2], (h1, h2), jnp.float32) * s,
        "b2":  jax.random.normal(ks[3], (1, h2), jnp.float32) * s,
        # GRU weights in (in, out) / (hidden, out) layout, gates split.
        "wir": jax.random.normal(ks[4], (h2, hidden), jnp.float32) * s,
        "wiz": jax.random.normal(ks[5], (h2, hidden), jnp.float32) * s,
        "win": jax.random.normal(ks[6], (h2, hidden), jnp.float32) * s,
        "whr": jax.random.normal(ks[7], (hidden, hidden), jnp.float32) * s,
        "whz": jax.random.normal(ks[8], (hidden, hidden), jnp.float32) * s,
        "whn": jax.random.normal(ks[9], (hidden, hidden), jnp.float32) * s,
        # combined biases br = b_ir + b_hr, bz = b_iz + b_hz; the n-gate biases
        # stay separate because b_hn is multiplied by r.
        "br":  jax.random.normal(ks[10], (1, hidden), jnp.float32) * s,
        "bz":  jax.random.normal(ks[11], (1, hidden), jnp.float32) * s,
        "bin": jnp.full((1, hidden), 0.01, jnp.float32),
        "bhn": jnp.full((1, hidden), -0.02, jnp.float32),
        "w3":  jax.random.normal(ks[12], (hidden, out), jnp.float32) * s,
        "b3":  jax.random.normal(ks[13], (1, out), jnp.float32) * s,
    }


@jax.jit
def my_variable_rnn_forward(seqs, lengths, w_slab):
    """seqs: (B, T, D) float32, lengths: (B,) int (descending), w_slab: packed params.

    Returns (B, 2).  Two input DMAs total: the per-call (Bp, 256) activation
    slab (x + lengths lane) and the packed weight slab.
    """
    B, T, D = seqs.shape
    assert T == SEQ_T and SEQ_T * D <= LANE
    Bp = ((B + 7) // 8) * 8          # pad batch to a full f32 sublane tile

    xs = jnp.zeros((Bp, XSLAB_COLS), jnp.float32)
    xs = xs.at[:B, :T * D].set(seqs.reshape(B, T * D).astype(jnp.float32))
    xs = xs.at[:B, LANE].set(lengths.astype(jnp.float32))

    vmem = pl.BlockSpec(memory_space=pltpu.MemorySpace.VMEM)
    out_full = pl.pallas_call(
        rnn_kernel,
        out_shape=jax.ShapeDtypeStruct((Bp, OUTP), jnp.float32),
        in_specs=[vmem, vmem],
        out_specs=vmem,
    )(xs, w_slab)
    return out_full[:B, :OUT]


def reference_forward(seqs, lengths, p):
    """Pure-JAX reference with identical semantics (sanity check)."""
    B, T, D = seqs.shape
    h = jnp.zeros((B, H), jnp.float32)
    for t in range(T):
        x = seqs[:, t, :]
        x1 = jnp.tanh(x @ p["w1"] + p["b1"])
        x2 = jnp.tanh(x1 @ p["w2"] + p["b2"])
        r = jax.nn.sigmoid(x2 @ p["wir"] + h @ p["whr"] + p["br"])
        z = jax.nn.sigmoid(x2 @ p["wiz"] + h @ p["whz"] + p["bz"])
        n = jnp.tanh(x2 @ p["win"] + p["bin"] + r * (h @ p["whn"] + p["bhn"]))
        h_new = (1.0 - z) * n + z * h
        mask = (lengths.reshape(B, 1) > t)
        h = jnp.where(mask, h_new, h)
    return jnp.tanh(h @ p["w3"] + p["b3"])


if __name__ == "__main__":
    key = jax.random.PRNGKey(0)
    B, T, D = 4, SEQ_T, 16
    k_seq, k_par = jax.random.split(key)

    seqs = jax.random.normal(k_seq, (B, T, D), jnp.float32)
    # descending, positive lengths (as required by pack_padded_sequence)
    lengths = jnp.array([8, 6, 5, 3], dtype=jnp.int32)
    params = init_params(k_par, D)
    w_slab = pack_params(params, D)          # packed ONCE per model, reused per call

    out = my_variable_rnn_forward(seqs, lengths, w_slab)
    out = jax.block_until_ready(out)

    ref = reference_forward(seqs, lengths, params)
    assert out.shape == (B, OUT)
    # Tolerance covers default MXU matmul precision (bf16 input rounding) in both
    # the reference and the kernel's hoisted dots; the recurrence itself is exact
    # f32 VPU math.  Real bugs (gate order / masking) produce O(1e-1) errors.
    assert jnp.allclose(out, ref, atol=5e-3, rtol=5e-3), (out, ref)

    print("KERNEL_OK")
</pallas_src>

<mosaic_0001>
module attributes {stable_mosaic.version = 11 : i64} {
  func.func @rnn_kernel(%arg0: memref<8x256xf32, #tpu.memory_space<vmem>>, %arg1: memref<136x384xf32, #tpu.memory_space<vmem>>, %arg2: memref<8x128xf32, #tpu.memory_space<vmem>>) attributes {dimension_semantics = [], scalar_prefetch = 0 : i64, scratch_operands = 0 : i64, tpu.core_type = #tpu.core_type<tc>} {
    %c0 = arith.constant 0 : index
    %c0_0 = arith.constant 0 : index
    %0 = vector.load %arg0[%c0, %c0_0] : memref<8x256xf32, #tpu.memory_space<vmem>>, vector<8x128xf32>
    %c0_1 = arith.constant 0 : index
    %c128 = arith.constant 128 : index
    %1 = vector.load %arg0[%c0_1, %c128] : memref<8x256xf32, #tpu.memory_space<vmem>>, vector<8x1xf32>
    %c0_2 = arith.constant 0 : index
    %c0_3 = arith.constant 0 : index
    %2 = vector.load %arg1[%c0_2, %c0_3] : memref<136x384xf32, #tpu.memory_space<vmem>>, vector<128x128xf32>
    %c0_4 = arith.constant 0 : index
    %c128_5 = arith.constant 128 : index
    %3 = vector.load %arg1[%c0_4, %c128_5] : memref<136x384xf32, #tpu.memory_space<vmem>>, vector<128x64xf32>
    %c0_6 = arith.constant 0 : index
    %c256 = arith.constant 256 : index
    %4 = vector.load %arg1[%c0_6, %c256] : memref<136x384xf32, #tpu.memory_space<vmem>>, vector<64x96xf32>
    %c128_7 = arith.constant 128 : index
    %c0_8 = arith.constant 0 : index
    %5 = vector.load %arg1[%c128_7, %c0_8] : memref<136x384xf32, #tpu.memory_space<vmem>>, vector<1x128xf32>
    %c128_9 = arith.constant 128 : index
    %c128_10 = arith.constant 128 : index
    %6 = vector.load %arg1[%c128_9, %c128_10] : memref<136x384xf32, #tpu.memory_space<vmem>>, vector<1x64xf32>
    %c128_11 = arith.constant 128 : index
    %c256_12 = arith.constant 256 : index
    %7 = vector.load %arg1[%c128_11, %c256_12] : memref<136x384xf32, #tpu.memory_space<vmem>>, vector<1x96xf32>
    %c128_13 = arith.constant 128 : index
    %c352 = arith.constant 352 : index
    %8 = vector.load %arg1[%c128_13, %c352] : memref<136x384xf32, #tpu.memory_space<vmem>>, vector<1x4xf32>
    %c129 = arith.constant 129 : index
    %c256_14 = arith.constant 256 : index
    %9 = vector.load %arg1[%c129, %c256_14] : memref<136x384xf32, #tpu.memory_space<vmem>>, vector<1x128xf32>
    %cst = arith.constant dense<0.000000e+00> : vector<8x128xf32>
    %10 = tpu.matmul %0, %2, %cst {dimension_numbers = #tpu.dot_dimension_numbers<[1], [0], [0], [1], [0, 0, 1, 1], [], []>} : vector<8x128xf32>, vector<128x128xf32>, vector<8x128xf32> -> vector<8x128xf32>
    %11 = vector.broadcast %5 : vector<1x128xf32> to vector<8x128xf32>
    %12 = arith.addf %10, %11 : vector<8x128xf32>
    %13 = math.tanh %12 : vector<8x128xf32>
    %cst_15 = arith.constant dense<0.000000e+00> : vector<8x64xf32>
    %14 = tpu.matmul %13, %3, %cst_15 {dimension_numbers = #tpu.dot_dimension_numbers<[1], [0], [0], [1], [0, 0, 1, 1], [], []>} : vector<8x128xf32>, vector<128x64xf32>, vector<8x64xf32> -> vector<8x64xf32>
    %15 = vector.broadcast %6 : vector<1x64xf32> to vector<8x64xf32>
    %16 = arith.addf %14, %15 : vector<8x64xf32>
    %17 = math.tanh %16 : vector<8x64xf32>
    %cst_16 = arith.constant dense<0.000000e+00> : vector<8x96xf32>
    %18 = tpu.matmul %17, %4, %cst_16 {dimension_numbers = #tpu.dot_dimension_numbers<[1], [0], [0], [1], [0, 0, 1, 1], [], []>} : vector<8x64xf32>, vector<64x96xf32>, vector<8x96xf32> -> vector<8x96xf32>
    %19 = vector.broadcast %7 : vector<1x96xf32> to vector<8x96xf32>
    %20 = arith.addf %18, %19 : vector<8x96xf32>
    %c0_17 = arith.constant 0 : index
    %c352_18 = arith.constant 352 : index
    %21 = vector.load %arg1[%c0_17, %c352_18] : memref<136x384xf32, #tpu.memory_space<vmem>>, vector<1x12xf32>
    %22 = vector.shape_cast %21 : vector<1x12xf32> to vector<1x12xf32>
    %23 = vector.broadcast %22 : vector<1x12xf32> to vector<8x12xf32>
    %c1 = arith.constant 1 : index
    %c352_19 = arith.constant 352 : index
    %24 = vector.load %arg1[%c1, %c352_19] : memref<136x384xf32, #tpu.memory_space<vmem>>, vector<1x12xf32>
    %25 = vector.shape_cast %24 : vector<1x12xf32> to vector<1x12xf32>
    %26 = vector.broadcast %25 : vector<1x12xf32> to vector<8x12xf32>
    %c2 = arith.constant 2 : index
    %c352_20 = arith.constant 352 : index
    %27 = vector.load %arg1[%c2, %c352_20] : memref<136x384xf32, #tpu.memory_space<vmem>>, vector<1x12xf32>
    %28 = vector.shape_cast %27 : vector<1x12xf32> to vector<1x12xf32>
    %29 = vector.broadcast %28 : vector<1x12xf32> to vector<8x12xf32>
    %c3 = arith.constant 3 : index
    %c352_21 = arith.constant 352 : index
    %30 = vector.load %arg1[%c3, %c352_21] : memref<136x384xf32, #tpu.memory_space<vmem>>, vector<1x12xf32>
    %31 = vector.shape_cast %30 : vector<1x12xf32> to vector<1x12xf32>
    %32 = vector.broadcast %31 : vector<1x12xf32> to vector<8x12xf32>
    %c64 = arith.constant 64 : index
    %c256_22 = arith.constant 256 : index
    %33 = vector.load %arg1[%c64, %c256_22] : memref<136x384xf32, #tpu.memory_space<vmem>>, vector<1x128xf32>
    %34 = vector.shape_cast %33 : vector<1x128xf32> to vector<1x128xf32>
    %35 = vector.broadcast %34 : vector<1x128xf32> to vector<8x128xf32>
    %c65 = arith.constant 65 : index
    %c256_23 = arith.constant 256 : index
    %36 = vector.load %arg1[%c65, %c256_23] : memref<136x384xf32, #tpu.memory_space<vmem>>, vector<1x128xf32>
    %37 = vector.shape_cast %36 : vector<1x128xf32> to vector<1x128xf32>
    %38 = vector.broadcast %37 : vector<1x128xf32> to vector<8x128xf32>
    %c66 = arith.constant 66 : index
    %c256_24 = arith.constant 256 : index
    %39 = vector.load %arg1[%c66, %c256_24] : memref<136x384xf32, #tpu.memory_space<vmem>>, vector<1x128xf32>
    %40 = vector.shape_cast %39 : vector<1x128xf32> to vector<1x128xf32>
    %41 = vector.broadcast %40 : vector<1x128xf32> to vector<8x128xf32>
    %c67 = arith.constant 67 : index
    %c256_25 = arith.constant 256 : index
    %42 = vector.load %arg1[%c67, %c256_25] : memref<136x384xf32, #tpu.memory_space<vmem>>, vector<1x128xf32>
    %43 = vector.shape_cast %42 : vector<1x128xf32> to vector<1x128xf32>
    %44 = vector.broadcast %43 : vector<1x128xf32> to vector<8x128xf32>
    %45 = vector.shape_cast %8 : vector<1x4xf32> to vector<1x4xf32>
    %46 = vector.broadcast %45 : vector<1x4xf32> to vector<8x4xf32>
    %cst_26 = arith.constant 0.000000e+00 : f32
    %47 = vector.broadcast %cst_26 : f32 to vector<8x4xf32>
    %48 = vector.extract_strided_slice %20 {offsets = [0, 0], sizes = [8, 12], strides = [1, 1]} : vector<8x96xf32> to vector<8x12xf32>
    %49 = vector.extract_strided_slice %47 {offsets = [0, 0], sizes = [8, 1], strides = [1, 1]} : vector<8x4xf32> to vector<8x1xf32>
    %50 = vector.broadcast %49 : vector<8x1xf32> to vector<8x12xf32>
    %51 = arith.mulf %50, %23 : vector<8x12xf32>
    %52 = vector.extract_strided_slice %47 {offsets = [0, 1], sizes = [8, 1], strides = [1, 1]} : vector<8x4xf32> to vector<8x1xf32>
    %53 = vector.broadcast %52 : vector<8x1xf32> to vector<8x12xf32>
    %54 = arith.mulf %53, %26 : vector<8x12xf32>
    %55 = arith.addf %51, %54 : vector<8x12xf32>
    %56 = vector.extract_strided_slice %47 {offsets = [0, 2], sizes = [8, 1], strides = [1, 1]} : vector<8x4xf32> to vector<8x1xf32>
    %57 = vector.broadcast %56 : vector<8x1xf32> to vector<8x12xf32>
    %58 = arith.mulf %57, %29 : vector<8x12xf32>
    %59 = vector.extract_strided_slice %47 {offsets = [0, 3], sizes = [8, 1], strides = [1, 1]} : vector<8x4xf32> to vector<8x1xf32>
    %60 = vector.broadcast %59 : vector<8x1xf32> to vector<8x12xf32>
    %61 = arith.mulf %60, %32 : vector<8x12xf32>
    %62 = arith.addf %58, %61 : vector<8x12xf32>
    %63 = arith.addf %55, %62 : vector<8x12xf32>
    %64 = vector.extract_strided_slice %48 {offsets = [0, 0], sizes = [8, 8], strides = [1, 1]} : vector<8x12xf32> to vector<8x8xf32>
    %65 = vector.extract_strided_slice %63 {offsets = [0, 0], sizes = [8, 8], strides = [1, 1]} : vector<8x12xf32> to vector<8x8xf32>
    %66 = arith.addf %64, %65 : vector<8x8xf32>
    %67 = arith.negf %66 : vector<8x8xf32>
    %68 = math.exp %67 : vector<8x8xf32>
    %cst_27 = arith.constant 1.000000e+00 : f32
    %69 = vector.broadcast %cst_27 : f32 to vector<8x8xf32>
    %70 = arith.addf %69, %68 : vector<8x8xf32>
    %71 = arith.divf %69, %70 : vector<8x8xf32>
    %72 = vector.extract_strided_slice %71 {offsets = [0, 0], sizes = [8, 4], strides = [1, 1]} : vector<8x8xf32> to vector<8x4xf32>
    %73 = vector.extract_strided_slice %71 {offsets = [0, 4], sizes = [8, 4], strides = [1, 1]} : vector<8x8xf32> to vector<8x4xf32>
    %74 = vector.extract_strided_slice %48 {offsets = [0, 8], sizes = [8, 4], strides = [1, 1]} : vector<8x12xf32> to vector<8x4xf32>
    %75 = vector.extract_strided_slice %63 {offsets = [0, 8], sizes = [8, 4], strides = [1, 1]} : vector<8x12xf32> to vector<8x4xf32>
    %76 = arith.addf %75, %46 : vector<8x4xf32>
    %77 = arith.mulf %72, %76 : vector<8x4xf32>
    %78 = arith.addf %74, %77 : vector<8x4xf32>
    %79 = math.tanh %78 : vector<8x4xf32>
    %cst_28 = arith.constant 1.000000e+00 : f32
    %80 = vector.broadcast %cst_28 : f32 to vector<8x4xf32>
    %81 = arith.subf %80, %73 : vector<8x4xf32>
    %82 = arith.mulf %81, %79 : vector<8x4xf32>
    %83 = arith.mulf %73, %47 : vector<8x4xf32>
    %84 = arith.addf %82, %83 : vector<8x4xf32>
    %cst_29 = arith.constant 0.000000e+00 : f32
    %85 = vector.broadcast %cst_29 : f32 to vector<8x1xf32>
    %86 = arith.cmpf ogt, %1, %85 : vector<8x1xf32>
    %87 = vector.shape_cast %86 : vector<8x1xi1> to vector<8x1xi1>
    %88 = vector.broadcast %87 : vector<8x1xi1> to vector<8x4xi1>
    %89 = arith.select %88, %84, %47 : vector<8x4xi1>, vector<8x4xf32>
    %90 = vector.extract_strided_slice %20 {offsets = [0, 12], sizes = [8, 12], strides = [1, 1]} : vector<8x96xf32> to vector<8x12xf32>
    %91 = vector.extract_strided_slice %89 {offsets = [0, 0], sizes = [8, 1], strides = [1, 1]} : vector<8x4xf32> to vector<8x1xf32>
    %92 = vector.broadcast %91 : vector<8x1xf32> to vector<8x12xf32>
    %93 = arith.mulf %92, %23 : vector<8x12xf32>
    %94 = vector.extract_strided_slice %89 {offsets = [0, 1], sizes = [8, 1], strides = [1, 1]} : vector<8x4xf32> to vector<8x1xf32>
    %95 = vector.broadcast %94 : vector<8x1xf32> to vector<8x12xf32>
    %96 = arith.mulf %95, %26 : vector<8x12xf32>
    %97 = arith.addf %93, %96 : vector<8x12xf32>
    %98 = vector.extract_strided_slice %89 {offsets = [0, 2], sizes = [8, 1], strides = [1, 1]} : vector<8x4xf32> to vector<8x1xf32>
    %99 = vector.broadcast %98 : vector<8x1xf32> to vector<8x12xf32>
    %100 = arith.mulf %99, %29 : vector<8x12xf32>
    %101 = vector.extract_strided_slice %89 {offsets = [0, 3], sizes = [8, 1], strides = [1, 1]} : vector<8x4xf32> to vector<8x1xf32>
    %102 = vector.broadcast %101 : vector<8x1xf32> to vector<8x12xf32>
    %103 = arith.mulf %102, %32 : vector<8x12xf32>
    %104 = arith.addf %100, %103 : vector<8x12xf32>
    %105 = arith.addf %97, %104 : vector<8x12xf32>
    %106 = vector.extract_strided_slice %90 {offsets = [0, 0], sizes = [8, 8], strides = [1, 1]} : vector<8x12xf32> to vector<8x8xf32>
    %107 = vector.extract_strided_slice %105 {offsets = [0, 0], sizes = [8, 8], strides = [1, 1]} : vector<8x12xf32> to vector<8x8xf32>
    %108 = arith.addf %106, %107 : vector<8x8xf32>
    %109 = arith.negf %108 : vector<8x8xf32>
    %110 = math.exp %109 : vector<8x8xf32>
    %cst_30 = arith.constant 1.000000e+00 : f32
    %111 = vector.broadcast %cst_30 : f32 to vector<8x8xf32>
    %112 = arith.addf %111, %110 : vector<8x8xf32>
    %113 = arith.divf %111, %112 : vector<8x8xf32>
    %114 = vector.extract_strided_slice %113 {offsets = [0, 0], sizes = [8, 4], strides = [1, 1]} : vector<8x8xf32> to vector<8x4xf32>
    %115 = vector.extract_strided_slice %113 {offsets = [0, 4], sizes = [8, 4], strides = [1, 1]} : vector<8x8xf32> to vector<8x4xf32>
    %116 = vector.extract_strided_slice %90 {offsets = [0, 8], sizes = [8, 4], strides = [1, 1]} : vector<8x12xf32> to vector<8x4xf32>
    %117 = vector.extract_strided_slice %105 {offsets = [0, 8], sizes = [8, 4], strides = [1, 1]} : vector<8x12xf32> to vector<8x4xf32>
    %118 = arith.addf %117, %46 : vector<8x4xf32>
    %119 = arith.mulf %114, %118 : vector<8x4xf32>
    %120 = arith.addf %116, %119 : vector<8x4xf32>
    %121 = math.tanh %120 : vector<8x4xf32>
    %cst_31 = arith.constant 1.000000e+00 : f32
    %122 = vector.broadcast %cst_31 : f32 to vector<8x4xf32>
    %123 = arith.subf %122, %115 : vector<8x4xf32>
    %124 = arith.mulf %123, %121 : vector<8x4xf32>
    %125 = arith.mulf %115, %89 : vector<8x4xf32>
    %126 = arith.addf %124, %125 : vector<8x4xf32>
    %cst_32 = arith.constant 1.000000e+00 : f32
    %127 = vector.broadcast %cst_32 : f32 to vector<8x1xf32>
    %128 = arith.cmpf ogt, %1, %127 : vector<8x1xf32>
    %129 = vector.shape_cast %128 : vector<8x1xi1> to vector<8x1xi1>
    %130 = vector.broadcast %129 : vector<8x1xi1> to vector<8x4xi1>
    %131 = arith.select %130, %126, %89 : vector<8x4xi1>, vector<8x4xf32>
    %132 = vector.extract_strided_slice %20 {offsets = [0, 24], sizes = [8, 12], strides = [1, 1]} : vector<8x96xf32> to vector<8x12xf32>
    %133 = vector.extract_strided_slice %131 {offsets = [0, 0], sizes = [8, 1], strides = [1, 1]} : vector<8x4xf32> to vector<8x1xf32>
    %134 = vector.broadcast %133 : vector<8x1xf32> to vector<8x12xf32>
    %135 = arith.mulf %134, %23 : vector<8x12xf32>
    %136 = vector.extract_strided_slice %131 {offsets = [0, 1], sizes = [8, 1], strides = [1, 1]} : vector<8x4xf32> to vector<8x1xf32>
    %137 = vector.broadcast %136 : vector<8x1xf32> to vector<8x12xf32>
    %138 = arith.mulf %137, %26 : vector<8x12xf32>
    %139 = arith.addf %135, %138 : vector<8x12xf32>
    %140 = vector.extract_strided_slice %131 {offsets = [0, 2], sizes = [8, 1], strides = [1, 1]} : vector<8x4xf32> to vector<8x1xf32>
    %141 = vector.broadcast %140 : vector<8x1xf32> to vector<8x12xf32>
    %142 = arith.mulf %141, %29 : vector<8x12xf32>
    %143 = vector.extract_strided_slice %131 {offsets = [0, 3], sizes = [8, 1], strides = [1, 1]} : vector<8x4xf32> to vector<8x1xf32>
    %144 = vector.broadcast %143 : vector<8x1xf32> to vector<8x12xf32>
    %145 = arith.mulf %144, %32 : vector<8x12xf32>
    %146 = arith.addf %142, %145 : vector<8x12xf32>
    %147 = arith.addf %139, %146 : vector<8x12xf32>
    %148 = vector.extract_strided_slice %132 {offsets = [0, 0], sizes = [8, 8], strides = [1, 1]} : vector<8x12xf32> to vector<8x8xf32>
    %149 = vector.extract_strided_slice %147 {offsets = [0, 0], sizes = [8, 8], strides = [1, 1]} : vector<8x12xf32> to vector<8x8xf32>
    %150 = arith.addf %148, %149 : vector<8x8xf32>
    %151 = arith.negf %150 : vector<8x8xf32>
    %152 = math.exp %151 : vector<8x8xf32>
    %cst_33 = arith.constant 1.000000e+00 : f32
    %153 = vector.broadcast %cst_33 : f32 to vector<8x8xf32>
    %154 = arith.addf %153, %152 : vector<8x8xf32>
    %155 = arith.divf %153, %154 : vector<8x8xf32>
    %156 = vector.extract_strided_slice %155 {offsets = [0, 0], sizes = [8, 4], strides = [1, 1]} : vector<8x8xf32> to vector<8x4xf32>
    %157 = vector.extract_strided_slice %155 {offsets = [0, 4], sizes = [8, 4], strides = [1, 1]} : vector<8x8xf32> to vector<8x4xf32>
    %158 = vector.extract_strided_slice %132 {offsets = [0, 8], sizes = [8, 4], strides = [1, 1]} : vector<8x12xf32> to vector<8x4xf32>
    %159 = vector.extract_strided_slice %147 {offsets = [0, 8], sizes = [8, 4], strides = [1, 1]} : vector<8x12xf32> to vector<8x4xf32>
    %160 = arith.addf %159, %46 : vector<8x4xf32>
    %161 = arith.mulf %156, %160 : vector<8x4xf32>
    %162 = arith.addf %158, %161 : vector<8x4xf32>
    %163 = math.tanh %162 : vector<8x4xf32>
    %cst_34 = arith.constant 1.000000e+00 : f32
    %164 = vector.broadcast %cst_34 : f32 to vector<8x4xf32>
    %165 = arith.subf %164, %157 : vector<8x4xf32>
    %166 = arith.mulf %165, %163 : vector<8x4xf32>
    %167 = arith.mulf %157, %131 : vector<8x4xf32>
    %168 = arith.addf %166, %167 : vector<8x4xf32>
    %cst_35 = arith.constant 2.000000e+00 : f32
    %169 = vector.broadcast %cst_35 : f32 to vector<8x1xf32>
    %170 = arith.cmpf ogt, %1, %169 : vector<8x1xf32>
    %171 = vector.shape_cast %170 : vector<8x1xi1> to vector<8x1xi1>
    %172 = vector.broadcast %171 : vector<8x1xi1> to vector<8x4xi1>
    %173 = arith.select %172, %168, %131 : vector<8x4xi1>, vector<8x4xf32>
    %174 = vector.extract_strided_slice %20 {offsets = [0, 36], sizes = [8, 12], strides = [1, 1]} : vector<8x96xf32> to vector<8x12xf32>
    %175 = vector.extract_strided_slice %173 {offsets = [0, 0], sizes = [8, 1], strides = [1, 1]} : vector<8x4xf32> to vector<8x1xf32>
    %176 = vector.broadcast %175 : vector<8x1xf32> to vector<8x12xf32>
    %177 = arith.mulf %176, %23 : vector<8x12xf32>
    %178 = vector.extract_strided_slice %173 {offsets = [0, 1], sizes = [8, 1], strides = [1, 1]} : vector<8x4xf32> to vector<8x1xf32>
    %179 = vector.broadcast %178 : vector<8x1xf32> to vector<8x12xf32>
    %180 = arith.mulf %179, %26 : vector<8x12xf32>
    %181 = arith.addf %177, %180 : vector<8x12xf32>
    %182 = vector.extract_strided_slice %173 {offsets = [0, 2], sizes = [8, 1], strides = [1, 1]} : vector<8x4xf32> to vector<8x1xf32>
    %183 = vector.broadcast %182 : vector<8x1xf32> to vector<8x12xf32>
    %184 = arith.mulf %183, %29 : vector<8x12xf32>
    %185 = vector.extract_strided_slice %173 {offsets = [0, 3], sizes = [8, 1], strides = [1, 1]} : vector<8x4xf32> to vector<8x1xf32>
    %186 = vector.broadcast %185 : vector<8x1xf32> to vector<8x12xf32>
    %187 = arith.mulf %186, %32 : vector<8x12xf32>
    %188 = arith.addf %184, %187 : vector<8x12xf32>
    %189 = arith.addf %181, %188 : vector<8x12xf32>
    %190 = vector.extract_strided_slice %174 {offsets = [0, 0], sizes = [8, 8], strides = [1, 1]} : vector<8x12xf32> to vector<8x8xf32>
    %191 = vector.extract_strided_slice %189 {offsets = [0, 0], sizes = [8, 8], strides = [1, 1]} : vector<8x12xf32> to vector<8x8xf32>
    %192 = arith.addf %190, %191 : vector<8x8xf32>
    %193 = arith.negf %192 : vector<8x8xf32>
    %194 = math.exp %193 : vector<8x8xf32>
    %cst_36 = arith.constant 1.000000e+00 : f32
    %195 = vector.broadcast %cst_36 : f32 to vector<8x8xf32>
    %196 = arith.addf %195, %194 : vector<8x8xf32>
    %197 = arith.divf %195, %196 : vector<8x8xf32>
    %198 = vector.extract_strided_slice %197 {offsets = [0, 0], sizes = [8, 4], strides = [1, 1]} : vector<8x8xf32> to vector<8x4xf32>
    %199 = vector.extract_strided_slice %197 {offsets = [0, 4], sizes = [8, 4], strides = [1, 1]} : vector<8x8xf32> to vector<8x4xf32>
    %200 = vector.extract_strided_slice %174 {offsets = [0, 8], sizes = [8, 4], strides = [1, 1]} : vector<8x12xf32> to vector<8x4xf32>
    %201 = vector.extract_strided_slice %189 {offsets = [0, 8], sizes = [8, 4], strides = [1, 1]} : vector<8x12xf32> to vector<8x4xf32>
    %202 = arith.addf %201, %46 : vector<8x4xf32>
    %203 = arith.mulf %198, %202 : vector<8x4xf32>
    %204 = arith.addf %200, %203 : vector<8x4xf32>
    %205 = math.tanh %204 : vector<8x4xf32>
    %cst_37 = arith.constant 1.000000e+00 : f32
    %206 = vector.broadcast %cst_37 : f32 to vector<8x4xf32>
    %207 = arith.subf %206, %199 : vector<8x4xf32>
    %208 = arith.mulf %207, %205 : vector<8x4xf32>
    %209 = arith.mulf %199, %173 : vector<8x4xf32>
    %210 = arith.addf %208, %209 : vector<8x4xf32>
    %cst_38 = arith.constant 3.000000e+00 : f32
    %211 = vector.broadcast %cst_38 : f32 to vector<8x1xf32>
    %212 = arith.cmpf ogt, %1, %211 : vector<8x1xf32>
    %213 = vector.shape_cast %212 : vector<8x1xi1> to vector<8x1xi1>
    %214 = vector.broadcast %213 : vector<8x1xi1> to vector<8x4xi1>
    %215 = arith.select %214, %210, %173 : vector<8x4xi1>, vector<8x4xf32>
    %216 = vector.extract_strided_slice %20 {offsets = [0, 48], sizes = [8, 12], strides = [1, 1]} : vector<8x96xf32> to vector<8x12xf32>
    %217 = vector.extract_strided_slice %215 {offsets = [0, 0], sizes = [8, 1], strides = [1, 1]} : vector<8x4xf32> to vector<8x1xf32>
    %218 = vector.broadcast %217 : vector<8x1xf32> to vector<8x12xf32>
    %219 = arith.mulf %218, %23 : vector<8x12xf32>
    %220 = vector.extract_strided_slice %215 {offsets = [0, 1], sizes = [8, 1], strides = [1, 1]} : vector<8x4xf32> to vector<8x1xf32>
    %221 = vector.broadcast %220 : vector<8x1xf32> to vector<8x12xf32>
    %222 = arith.mulf %221, %26 : vector<8x12xf32>
    %223 = arith.addf %219, %222 : vector<8x12xf32>
    %224 = vector.extract_strided_slice %215 {offsets = [0, 2], sizes = [8, 1], strides = [1, 1]} : vector<8x4xf32> to vector<8x1xf32>
    %225 = vector.broadcast %224 : vector<8x1xf32> to vector<8x12xf32>
    %226 = arith.mulf %225, %29 : vector<8x12xf32>
    %227 = vector.extract_strided_slice %215 {offsets = [0, 3], sizes = [8, 1], strides = [1, 1]} : vector<8x4xf32> to vector<8x1xf32>
    %228 = vector.broadcast %227 : vector<8x1xf32> to vector<8x12xf32>
    %229 = arith.mulf %228, %32 : vector<8x12xf32>
    %230 = arith.addf %226, %229 : vector<8x12xf32>
    %231 = arith.addf %223, %230 : vector<8x12xf32>
    %232 = vector.extract_strided_slice %216 {offsets = [0, 0], sizes = [8, 8], strides = [1, 1]} : vector<8x12xf32> to vector<8x8xf32>
    %233 = vector.extract_strided_slice %231 {offsets = [0, 0], sizes = [8, 8], strides = [1, 1]} : vector<8x12xf32> to vector<8x8xf32>
    %234 = arith.addf %232, %233 : vector<8x8xf32>
    %235 = arith.negf %234 : vector<8x8xf32>
    %236 = math.exp %235 : vector<8x8xf32>
    %cst_39 = arith.constant 1.000000e+00 : f32
    %237 = vector.broadcast %cst_39 : f32 to vector<8x8xf32>
    %238 = arith.addf %237, %236 : vector<8x8xf32>
    %239 = arith.divf %237, %238 : vector<8x8xf32>
    %240 = vector.extract_strided_slice %239 {offsets = [0, 0], sizes = [8, 4], strides = [1, 1]} : vector<8x8xf32> to vector<8x4xf32>
    %241 = vector.extract_strided_slice %239 {offsets = [0, 4], sizes = [8, 4], strides = [1, 1]} : vector<8x8xf32> to vector<8x4xf32>
    %242 = vector.extract_strided_slice %216 {offsets = [0, 8], sizes = [8, 4], strides = [1, 1]} : vector<8x12xf32> to vector<8x4xf32>
    %243 = vector.extract_strided_slice %231 {offsets = [0, 8], sizes = [8, 4], strides = [1, 1]} : vector<8x12xf32> to vector<8x4xf32>
    %244 = arith.addf %243, %46 : vector<8x4xf32>
    %245 = arith.mulf %240, %244 : vector<8x4xf32>
    %246 = arith.addf %242, %245 : vector<8x4xf32>
    %247 = math.tanh %246 : vector<8x4xf32>
    %cst_40 = arith.constant 1.000000e+00 : f32
    %248 = vector.broadcast %cst_40 : f32 to vector<8x4xf32>
    %249 = arith.subf %248, %241 : vector<8x4xf32>
    %250 = arith.mulf %249, %247 : vector<8x4xf32>
    %251 = arith.mulf %241, %215 : vector<8x4xf32>
    %252 = arith.addf %250, %251 : vector<8x4xf32>
    %cst_41 = arith.constant 4.000000e+00 : f32
    %253 = vector.broadcast %cst_41 : f32 to vector<8x1xf32>
    %254 = arith.cmpf ogt, %1, %253 : vector<8x1xf32>
    %255 = vector.shape_cast %254 : vector<8x1xi1> to vector<8x1xi1>
    %256 = vector.broadcast %255 : vector<8x1xi1> to vector<8x4xi1>
    %257 = arith.select %256, %252, %215 : vector<8x4xi1>, vector<8x4xf32>
    %258 = vector.extract_strided_slice %20 {offsets = [0, 60], sizes = [8, 12], strides = [1, 1]} : vector<8x96xf32> to vector<8x12xf32>
    %259 = vector.extract_strided_slice %257 {offsets = [0, 0], sizes = [8, 1], strides = [1, 1]} : vector<8x4xf32> to vector<8x1xf32>
    %260 = vector.broadcast %259 : vector<8x1xf32> to vector<8x12xf32>
    %261 = arith.mulf %260, %23 : vector<8x12xf32>
    %262 = vector.extract_strided_slice %257 {offsets = [0, 1], sizes = [8, 1], strides = [1, 1]} : vector<8x4xf32> to vector<8x1xf32>
    %263 = vector.broadcast %262 : vector<8x1xf32> to vector<8x12xf32>
    %264 = arith.mulf %263, %26 : vector<8x12xf32>
    %265 = arith.addf %261, %264 : vector<8x12xf32>
    %266 = vector.extract_strided_slice %257 {offsets = [0, 2], sizes = [8, 1], strides = [1, 1]} : vector<8x4xf32> to vector<8x1xf32>
    %267 = vector.broadcast %266 : vector<8x1xf32> to vector<8x12xf32>
    %268 = arith.mulf %267, %29 : vector<8x12xf32>
    %269 = vector.extract_strided_slice %257 {offsets = [0, 3], sizes = [8, 1], strides = [1, 1]} : vector<8x4xf32> to vector<8x1xf32>
    %270 = vector.broadcast %269 : vector<8x1xf32> to vector<8x12xf32>
    %271 = arith.mulf %270, %32 : vector<8x12xf32>
    %272 = arith.addf %268, %271 : vector<8x12xf32>
    %273 = arith.addf %265, %272 : vector<8x12xf32>
    %274 = vector.extract_strided_slice %258 {offsets = [0, 0], sizes = [8, 8], strides = [1, 1]} : vector<8x12xf32> to vector<8x8xf32>
    %275 = vector.extract_strided_slice %273 {offsets = [0, 0], sizes = [8, 8], strides = [1, 1]} : vector<8x12xf32> to vector<8x8xf32>
    %276 = arith.addf %274, %275 : vector<8x8xf32>
    %277 = arith.negf %276 : vector<8x8xf32>
    %278 = math.exp %277 : vector<8x8xf32>
    %cst_42 = arith.constant 1.000000e+00 : f32
    %279 = vector.broadcast %cst_42 : f32 to vector<8x8xf32>
    %280 = arith.addf %279, %278 : vector<8x8xf32>
    %281 = arith.divf %279, %280 : vector<8x8xf32>
    %282 = vector.extract_strided_slice %281 {offsets = [0, 0], sizes = [8, 4], strides = [1, 1]} : vector<8x8xf32> to vector<8x4xf32>
    %283 = vector.extract_strided_slice %281 {offsets = [0, 4], sizes = [8, 4], strides = [1, 1]} : vector<8x8xf32> to vector<8x4xf32>
    %284 = vector.extract_strided_slice %258 {offsets = [0, 8], sizes = [8, 4], strides = [1, 1]} : vector<8x12xf32> to vector<8x4xf32>
    %285 = vector.extract_strided_slice %273 {offsets = [0, 8], sizes = [8, 4], strides = [1, 1]} : vector<8x12xf32> to vector<8x4xf32>
    %286 = arith.addf %285, %46 : vector<8x4xf32>
    %287 = arith.mulf %282, %286 : vector<8x4xf32>
    %288 = arith.addf %284, %287 : vector<8x4xf32>
    %289 = math.tanh %288 : vector<8x4xf32>
    %cst_43 = arith.constant 1.000000e+00 : f32
    %290 = vector.broadcast %cst_43 : f32 to vector<8x4xf32>
    %291 = arith.subf %290, %283 : vector<8x4xf32>
    %292 = arith.mulf %291, %289 : vector<8x4xf32>
    %293 = arith.mulf %283, %257 : vector<8x4xf32>
    %294 = arith.addf %292, %293 : vector<8x4xf32>
    %cst_44 = arith.constant 5.000000e+00 : f32
    %295 = vector.broadcast %cst_44 : f32 to vector<8x1xf32>
    %296 = arith.cmpf ogt, %1, %295 : vector<8x1xf32>
    %297 = vector.shape_cast %296 : vector<8x1xi1> to vector<8x1xi1>
    %298 = vector.broadcast %297 : vector<8x1xi1> to vector<8x4xi1>
    %299 = arith.select %298, %294, %257 : vector<8x4xi1>, vector<8x4xf32>
    %300 = vector.extract_strided_slice %20 {offsets = [0, 72], sizes = [8, 12], strides = [1, 1]} : vector<8x96xf32> to vector<8x12xf32>
    %301 = vector.extract_strided_slice %299 {offsets = [0, 0], sizes = [8, 1], strides = [1, 1]} : vector<8x4xf32> to vector<8x1xf32>
    %302 = vector.broadcast %301 : vector<8x1xf32> to vector<8x12xf32>
    %303 = arith.mulf %302, %23 : vector<8x12xf32>
    %304 = vector.extract_strided_slice %299 {offsets = [0, 1], sizes = [8, 1], strides = [1, 1]} : vector<8x4xf32> to vector<8x1xf32>
    %305 = vector.broadcast %304 : vector<8x1xf32> to vector<8x12xf32>
    %306 = arith.mulf %305, %26 : vector<8x12xf32>
    %307 = arith.addf %303, %306 : vector<8x12xf32>
    %308 = vector.extract_strided_slice %299 {offsets = [0, 2], sizes = [8, 1], strides = [1, 1]} : vector<8x4xf32> to vector<8x1xf32>
    %309 = vector.broadcast %308 : vector<8x1xf32> to vector<8x12xf32>
    %310 = arith.mulf %309, %29 : vector<8x12xf32>
    %311 = vector.extract_strided_slice %299 {offsets = [0, 3], sizes = [8, 1], strides = [1, 1]} : vector<8x4xf32> to vector<8x1xf32>
    %312 = vector.broadcast %311 : vector<8x1xf32> to vector<8x12xf32>
    %313 = arith.mulf %312, %32 : vector<8x12xf32>
    %314 = arith.addf %310, %313 : vector<8x12xf32>
    %315 = arith.addf %307, %314 : vector<8x12xf32>
    %316 = vector.extract_strided_slice %300 {offsets = [0, 0], sizes = [8, 8], strides = [1, 1]} : vector<8x12xf32> to vector<8x8xf32>
    %317 = vector.extract_strided_slice %315 {offsets = [0, 0], sizes = [8, 8], strides = [1, 1]} : vector<8x12xf32> to vector<8x8xf32>
    %318 = arith.addf %316, %317 : vector<8x8xf32>
    %319 = arith.negf %318 : vector<8x8xf32>
    %320 = math.exp %319 : vector<8x8xf32>
    %cst_45 = arith.constant 1.000000e+00 : f32
    %321 = vector.broadcast %cst_45 : f32 to vector<8x8xf32>
    %322 = arith.addf %321, %320 : vector<8x8xf32>
    %323 = arith.divf %321, %322 : vector<8x8xf32>
    %324 = vector.extract_strided_slice %323 {offsets = [0, 0], sizes = [8, 4], strides = [1, 1]} : vector<8x8xf32> to vector<8x4xf32>
    %325 = vector.extract_strided_slice %323 {offsets = [0, 4], sizes = [8, 4], strides = [1, 1]} : vector<8x8xf32> to vector<8x4xf32>
    %326 = vector.extract_strided_slice %300 {offsets = [0, 8], sizes = [8, 4], strides = [1, 1]} : vector<8x12xf32> to vector<8x4xf32>
    %327 = vector.extract_strided_slice %315 {offsets = [0, 8], sizes = [8, 4], strides = [1, 1]} : vector<8x12xf32> to vector<8x4xf32>
    %328 = arith.addf %327, %46 : vector<8x4xf32>
    %329 = arith.mulf %324, %328 : vector<8x4xf32>
    %330 = arith.addf %326, %329 : vector<8x4xf32>
    %331 = math.tanh %330 : vector<8x4xf32>
    %cst_46 = arith.constant 1.000000e+00 : f32
    %332 = vector.broadcast %cst_46 : f32 to vector<8x4xf32>
    %333 = arith.subf %332, %325 : vector<8x4xf32>
    %334 = arith.mulf %333, %331 : vector<8x4xf32>
    %335 = arith.mulf %325, %299 : vector<8x4xf32>
    %336 = arith.addf %334, %335 : vector<8x4xf32>
    %cst_47 = arith.constant 6.000000e+00 : f32
    %337 = vector.broadcast %cst_47 : f32 to vector<8x1xf32>
    %338 = arith.cmpf ogt, %1, %337 : vector<8x1xf32>
    %339 = vector.shape_cast %338 : vector<8x1xi1> to vector<8x1xi1>
    %340 = vector.broadcast %339 : vector<8x1xi1> to vector<8x4xi1>
    %341 = arith.select %340, %336, %299 : vector<8x4xi1>, vector<8x4xf32>
    %342 = vector.extract_strided_slice %20 {offsets = [0, 84], sizes = [8, 12], strides = [1, 1]} : vector<8x96xf32> to vector<8x12xf32>
    %343 = vector.extract_strided_slice %341 {offsets = [0, 0], sizes = [8, 1], strides = [1, 1]} : vector<8x4xf32> to vector<8x1xf32>
    %344 = vector.broadcast %343 : vector<8x1xf32> to vector<8x12xf32>
    %345 = arith.mulf %344, %23 : vector<8x12xf32>
    %346 = vector.extract_strided_slice %341 {offsets = [0, 1], sizes = [8, 1], strides = [1, 1]} : vector<8x4xf32> to vector<8x1xf32>
    %347 = vector.broadcast %346 : vector<8x1xf32> to vector<8x12xf32>
    %348 = arith.mulf %347, %26 : vector<8x12xf32>
    %349 = arith.addf %345, %348 : vector<8x12xf32>
    %350 = vector.extract_strided_slice %341 {offsets = [0, 2], sizes = [8, 1], strides = [1, 1]} : vector<8x4xf32> to vector<8x1xf32>
    %351 = vector.broadcast %350 : vector<8x1xf32> to vector<8x12xf32>
    %352 = arith.mulf %351, %29 : vector<8x12xf32>
    %353 = vector.extract_strided_slice %341 {offsets = [0, 3], sizes = [8, 1], strides = [1, 1]} : vector<8x4xf32> to vector<8x1xf32>
    %354 = vector.broadcast %353 : vector<8x1xf32> to vector<8x12xf32>
    %355 = arith.mulf %354, %32 : vector<8x12xf32>
    %356 = arith.addf %352, %355 : vector<8x12xf32>
    %357 = arith.addf %349, %356 : vector<8x12xf32>
    %358 = vector.extract_strided_slice %342 {offsets = [0, 0], sizes = [8, 8], strides = [1, 1]} : vector<8x12xf32> to vector<8x8xf32>
    %359 = vector.extract_strided_slice %357 {offsets = [0, 0], sizes = [8, 8], strides = [1, 1]} : vector<8x12xf32> to vector<8x8xf32>
    %360 = arith.addf %358, %359 : vector<8x8xf32>
    %361 = arith.negf %360 : vector<8x8xf32>
    %362 = math.exp %361 : vector<8x8xf32>
    %cst_48 = arith.constant 1.000000e+00 : f32
    %363 = vector.broadcast %cst_48 : f32 to vector<8x8xf32>
    %364 = arith.addf %363, %362 : vector<8x8xf32>
    %365 = arith.divf %363, %364 : vector<8x8xf32>
    %366 = vector.extract_strided_slice %365 {offsets = [0, 0], sizes = [8, 4], strides = [1, 1]} : vector<8x8xf32> to vector<8x4xf32>
    %367 = vector.extract_strided_slice %365 {offsets = [0, 4], sizes = [8, 4], strides = [1, 1]} : vector<8x8xf32> to vector<8x4xf32>
    %368 = vector.extract_strided_slice %342 {offsets = [0, 8], sizes = [8, 4], strides = [1, 1]} : vector<8x12xf32> to vector<8x4xf32>
    %369 = vector.extract_strided_slice %357 {offsets = [0, 8], sizes = [8, 4], strides = [1, 1]} : vector<8x12xf32> to vector<8x4xf32>
    %370 = arith.addf %369, %46 : vector<8x4xf32>
    %371 = arith.mulf %366, %370 : vector<8x4xf32>
    %372 = arith.addf %368, %371 : vector<8x4xf32>
    %373 = math.tanh %372 : vector<8x4xf32>
    %cst_49 = arith.constant 1.000000e+00 : f32
    %374 = vector.broadcast %cst_49 : f32 to vector<8x4xf32>
    %375 = arith.subf %374, %367 : vector<8x4xf32>
    %376 = arith.mulf %375, %373 : vector<8x4xf32>
    %377 = arith.mulf %367, %341 : vector<8x4xf32>
    %378 = arith.addf %376, %377 : vector<8x4xf32>
    %cst_50 = arith.constant 7.000000e+00 : f32
    %379 = vector.broadcast %cst_50 : f32 to vector<8x1xf32>
    %380 = arith.cmpf ogt, %1, %379 : vector<8x1xf32>
    %381 = vector.shape_cast %380 : vector<8x1xi1> to vector<8x1xi1>
    %382 = vector.broadcast %381 : vector<8x1xi1> to vector<8x4xi1>
    %383 = arith.select %382, %378, %341 : vector<8x4xi1>, vector<8x4xf32>
    %384 = vector.extract_strided_slice %383 {offsets = [0, 0], sizes = [8, 1], strides = [1, 1]} : vector<8x4xf32> to vector<8x1xf32>
    %385 = vector.broadcast %384 : vector<8x1xf32> to vector<8x128xf32>
    %386 = arith.mulf %385, %35 : vector<8x128xf32>
    %387 = vector.extract_strided_slice %383 {offsets = [0, 1], sizes = [8, 1], strides = [1, 1]} : vector<8x4xf32> to vector<8x1xf32>
    %388 = vector.broadcast %387 : vector<8x1xf32> to vector<8x128xf32>
    %389 = arith.mulf %388, %38 : vector<8x128xf32>
    %390 = arith.addf %386, %389 : vector<8x128xf32>
    %391 = vector.extract_strided_slice %383 {offsets = [0, 2], sizes = [8, 1], strides = [1, 1]} : vector<8x4xf32> to vector<8x1xf32>
    %392 = vector.broadcast %391 : vector<8x1xf32> to vector<8x128xf32>
    %393 = arith.mulf %392, %41 : vector<8x128xf32>
    %394 = vector.extract_strided_slice %383 {offsets = [0, 3], sizes = [8, 1], strides = [1, 1]} : vector<8x4xf32> to vector<8x1xf32>
    %395 = vector.broadcast %394 : vector<8x1xf32> to vector<8x128xf32>
    %396 = arith.mulf %395, %44 : vector<8x128xf32>
    %397 = arith.addf %393, %396 : vector<8x128xf32>
    %398 = arith.addf %390, %397 : vector<8x128xf32>
    %399 = vector.broadcast %9 : vector<1x128xf32> to vector<8x128xf32>
    %400 = arith.addf %398, %399 : vector<8x128xf32>
    %401 = math.tanh %400 : vector<8x128xf32>
    %c0_51 = arith.constant 0 : index
    %c0_52 = arith.constant 0 : index
    %402 = vector.load %arg2[%c0_51, %c0_52] : memref<8x128xf32, #tpu.memory_space<vmem>>, vector<8x128xf32>
    tpu.vector_store %arg2[%c0_51, %c0_52], %401 {strides = array<i32>} : memref<8x128xf32, #tpu.memory_space<vmem>>, vector<8x128xf32>,
    return
  }
}

</mosaic_0001>

<bundles_post_ra>
// kernel: my_variable_rnn_forward.1
= control target key start
LH: loop header
LB: loop body
LE: loop exit
PB: predicated region body
PF: predicated region fallthrough
CT: control target
= control target key end

     0   :  { %7 = vsyncpa [#allocation3], 0  ;;  %s1207_s9 = smov [#allocation2]   ;;  %s1446_s0 = inlined_call_operand.vmem [shape: f32[8,256], index: 0, kind: input, shape index: {}]   ;;  %s1447_s1 = inlined_call_operand.hbm [shape: f32[136,384], index: 1, kind: input, shape index: {}]   ;;  %s1448_s2 = inlined_call_operand.vmem [shape: f32[8,128], index: 2, kind: output, shape index: {}]  }
   0x1   :  { %s15_s10 = sshll.u32 %s1207_s9, 4  ;;  %s1183_s13 = scalar_lea.hbm %s1447_s1, 6528  ;;  %s16_s10 = int_to_ptr.vmem [resolvable:$true] %s15_s10 }
   0x2   :  { %p1184_p0 = scmp.ne.s32.totalorder %s1447_s1, %s1183_s13  ;;  %p1187_p1 = scmp.lt.u32.totalorder %s1183_s13, %s1447_s1 }
   0x4   :  { %p1189_p2 = pnand %p1187_p1, %p1184_p0 }
   0x6   :  { %1192 = shalt.err (!%p1189_p2)
}
   0x7   :  { %s1193_s18 = scalar_lea.vmem %s16_s10, 6528  ;;  %p1198_p4 = scmp.lt.s32.totalorder %s16_s10, %s16_s10 }
   0x8   :  { %p1194_p3 = scmp.ne.s32.totalorder %s16_s10, %s1193_s18  ;;  %p1199_p5 = scmp.lt.s32.totalorder %s1193_s18, %s1193_s18 }
   0xa   :  { %p1200_p6 = por %p1199_p5, %p1198_p4 }
   0xc   :  { %p1201_p7 = pnand %p1200_p6, %p1194_p3 }
   0xe   :  { %1204 = shalt.err (!%p1201_p7)
}
   0xf   :  { %s1208_s19 = smov 384   ;;  %s1209_s20 = smov 24  }
  0x10   :  { %21 = dma.hbm_to_vmem [thread:$0]  %s1447_s1, 6528, %s16_s10, [#allocation3], %s1208_s19, %s1208_s19, %s1209_s20  }
  0x11   :  { %1205 = dma.done.wait [#allocation3], 6528  }
  0x12   :  { %1206 = vsyncadd [#allocation3], 4294960768  ;;  %v1210_v0 = vmov 0.0|0.0   ;;  %vm1211_vm0 = vmmov 0   ;;  %v1212_v1 = vmov 0.0   ;;  %v27_v2 = vld [vmem:[#allocation2] sm:$0xff] }
  0x13   :  { %972 = vmatprep.subr.bf16.mxu0 %v1210_v0  ;;  %915 = vmatprep.mubr.msk.f32.mxu0 %vm1211_vm0, %v1212_v1  ;;  %v28_v3 = vld [vmem:[#allocation2 + $0x18] sm:$0xff]  ;;  %v29_v4 = vld [vmem:[#allocation2 + $0x30] sm:$0xff]  ;;  %v30_v6 = vld [vmem:[#allocation2 + $0x48] sm:$0xff]  ;;  %s1213_s24 = smov 8   ;;  %s1214_s25 = smov 32   ;;  %vm213_vm1 = vcmask 523264  }
  0x14   :  { %996 = vmatprep.subr.bf16.mxu1 %v1210_v0  ;;  %950 = vmatprep.mubr.msk.f32.mxu1 %vm1211_vm0, %v1212_v1  ;;  %v973_v5 = vpack.c.bf16 %v28_v3, %v27_v2  ;;  %v976_v7 = vpack.c.bf16 %v30_v6, %v29_v4  ;;  %v31_v8 = vld [vmem:[#allocation2 + $0x60] sm:$0xff]  ;;  %v32_v9 = vld [vmem:[#allocation2 + $0x78] sm:$0xff]  ;;  %v43_v10 = vld [vmem:[#allocation2 + $0x8] sm:$0xff]  ;;  %s1221_s28 = smov 44   ;;  %s1222_s29 = smov 36  }
  0x15   :  { %v44_v11 = vld [vmem:[#allocation2 + $0x20] sm:$0xff]  ;;  %v45_v12 = vld [vmem:[#allocation2 + $0x38] sm:$0xff]  ;;  %v46_v13 = vld [vmem:[#allocation2 + $0x50] sm:$0xff]  ;;  %v979_v14 = vpack.c.bf16 %v32_v9, %v31_v8  ;;  %s1223_s30 = smov 12   ;;  %s1228_s3 = smov 56  }
  0x16   :  { %974 = vmatpush3.bf16.msra.mxu0 %v973_v5  ;;  %v997_v15 = vpack.c.bf16 %v44_v11, %v43_v10  ;;  %v33_v16 = vld [vmem:[#allocation2 + $0x90] sm:$0xff]  ;;  %v34_v17 = vld [vmem:[#allocation2 + $0xa8] sm:$0xff]  ;;  %v1000_v18 = vpack.c.bf16 %v46_v13, %v45_v12  ;;  %v48_v20 = vld [vmem:[#allocation2 + $0x80] sm:$0xff]  ;;  %s1229_s4 = smov 48   ;;  %s1234_s5 = smov 68  }
  0x17   :  { %975 = vmatprep.subr.bf16.mxu0 %v1210_v0  ;;  %v47_v19 = vld [vmem:[#allocation2 + $0x68] sm:$0xff]  ;;  %v982_v21 = vpack.c.bf16 %v34_v17, %v33_v16  ;;  %v35_v22 = vld [vmem:[#allocation2 + $0xc0] sm:$0xff]  ;;  %v36_v23 = vld [vmem:[#allocation2 + $0xd8] sm:$0xff]  ;;  %s1235_s6 = smov 60   ;;  %s1240_s7 = smov 80  }
  0x18   :  { %998 = vmatpush3.bf16.msra.mxu1 %v997_v15  ;;  %v1003_v24 = vpack.c.bf16 %v48_v20, %v47_v19  ;;  %v49_v25 = vld [vmem:[#allocation2 + $0x98] sm:$0xff]  ;;  %v50_v26 = vld [vmem:[#allocation2 + $0xb0] sm:$0xff]  ;;  %v985_v27 = vpack.c.bf16 %v36_v23, %v35_v22  ;;  %v38_v29 = vld [vmem:[#allocation2 + $0x108] sm:$0xff]  ;;  %s1241_s8 = smov 72   ;;  %s1246_s9 = smov 92  }
  0x19   :  { %999 = vmatprep.subr.bf16.mxu1 %v1210_v0  ;;  %v37_v28 = vld [vmem:[#allocation2 + $0xf0] sm:$0xff]  ;;  %v1006_v30 = vpack.c.bf16 %v50_v26, %v49_v25  ;;  %v51_v31 = vld [vmem:[#allocation2 + $0xc8] sm:$0xff]  ;;  %v52_v32 = vld [vmem:[#allocation2 + $0xe0] sm:$0xff]  ;;  %s1247_s10 = smov 84   ;;  %s1252_s11 = smov 104  }
  0x1a   :  { %977 = vmatpush3.bf16.msra.mxu0 %v976_v7  ;;  %v988_v33 = vpack.c.bf16 %v38_v29, %v37_v28  ;;  %v39_v34 = vld [vmem:[#allocation2 + $0x120] sm:$0xff]  ;;  %v40_v35 = vld [vmem:[#allocation2 + $0x138] sm:$0xff]  ;;  %v1009_v36 = vpack.c.bf16 %v52_v32, %v51_v31  ;;  %v41_v38 = vld [vmem:[#allocation2 + $0x150] sm:$0xff]  ;;  %v1215_v32 = vmov 0   ;;  %s1253_s12 = smov 96   ;;  %s1258_s13 = smov 116  }
  0x1b   :  { %978 = vmatprep.subr.bf16.mxu0 %v1210_v0  ;;  %v991_v37 = vpack.c.bf16 %v40_v35, %v39_v34  ;;  %v42_v39 = vld [vmem:[#allocation2 + $0x168] sm:$0xff]  ;;  %v25_v41 = vld [vmem:[%s1446_s0] sm:$0xff]  ;;  %v53_v42 = vld [vmem:[#allocation2 + $0xf8] sm:$0xff]  ;;  %1089 = vset.pattern.permute.xlu0 %v1215_v32  ;;  %s1259_s14 = smov 108  }
  0x1c   :  { %1001 = vmatpush3.bf16.msra.mxu1 %v1000_v18  ;;  %v994_v40 = vpack.c.bf16 %v42_v39, %v41_v38  ;;  %v54_v43 = vld [vmem:[#allocation2 + $0x110] sm:$0xff]  ;;  %v55_v45 = vld [vmem:[#allocation2 + $0x128] sm:$0xff]  ;;  %v56_v46 = vld [vmem:[#allocation2 + $0x140] sm:$0xff]  ;;  %v1216_v39 = vmov 4  }
  0x1d   :  { %1002 = vmatprep.subr.bf16.mxu1 %v1210_v0  ;;  %v1012_v44 = vpack.c.bf16 %v54_v43, %v53_v42  ;;  %v1015_v47 = vpack.c.bf16 %v56_v46, %v55_v45  ;;  %v57_v48 = vld [vmem:[#allocation2 + $0x158] sm:$0xff]  ;;  %v58_v49 = vld [vmem:[#allocation2 + $0x170] sm:$0xff]  ;;  %v60_v52 = vld [vmem:[#allocation2 + $0x28] sm:$0xff]  ;;  %1090 = vset.pattern.permute.xlu1 %v1216_v39 }
  0x1e   :  { %980 = vmatpush3.bf16.msra.mxu0 %v979_v14  ;;  %v1018_v50 = vpack.c.bf16 %v58_v49, %v57_v48  ;;  %v59_v51 = vld [vmem:[#allocation2 + $0x10] sm:$0xff]  ;;  %v67_v54 = vld [vmem:[#allocation2 + $0x180] ss:$0 sm:$0xff]  ;;  %v62_v60 = vld [vmem:[#allocation2 + $0x58] sm:$0xff]  ;;  %v1219_v49 = vmov 6  }
  0x1f   :  { %981 = vmatprep.subr.bf16.mxu0 %v1210_v0  ;;  %v1021_v53 = vpack.c.bf16 %v60_v52, %v59_v51  ;;  %v61_v59 = vld [vmem:[#allocation2 + $0x40] sm:$0xff]  ;;  %v63_v62 = vld [vmem:[#allocation2 + $0x70] sm:$0xff]  ;;  %v64_v63 = vld [vmem:[#allocation2 + $0x88] sm:$0xff] }
  0x20   :  { %1004 = vmatpush3.bf16.msra.mxu1 %v1003_v24  ;;  %v1024_v61 = vpack.c.bf16 %v62_v60, %v61_v59  ;;  %v65_v2 = vld [vmem:[#allocation2 + $0xa0] sm:$0xff]  ;;  %v66_v3 = vld [vmem:[#allocation2 + $0xb8] sm:$0xff]  ;;  %v69_v5 = vld [vmem:[#allocation2 + $0x190] ss:$0 sm:$0xff] }
  0x21   :  { %1005 = vmatprep.subr.bf16.mxu1 %v1210_v0  ;;  %v1030_v4 = vpack.c.bf16 %v66_v3, %v65_v2  ;;  %v1321_v6 = vld [vmem:[#allocation2 + $0x10] ss:$0 sm:$0xff]  ;;  %314 = vrot.lane.b32.xlu0 %v69_v5, %s1213_s24  ;;  %v1324_v7 = vld [vmem:[#allocation2 + $0x11] ss:$0 sm:$0xff]  ;;  %v1326_v8 = vld [vmem:[#allocation2 + $0x12] ss:$0 sm:$0xff] }
  0x22   :  { %983 = vmatpush3.bf16.msra.mxu0 %v982_v21  ;;  %v1328_v9 = vld [vmem:[#allocation2 + $0x13] ss:$0 sm:$0xff]  ;;  %v295_v10 = vmul.f32 0.0, %v1321_v6  ;;  %v296_v11 = vmul.f32 0.0, %v1324_v7  ;;  %v298_v12 = vmul.f32 0.0, %v1326_v8  ;;  %v1344_v31 = vld [vmem:[%s1446_s0 + $0x8] sm:$0xff] }
  0x23   :  { %984 = vmatprep.subr.bf16.mxu0 %v1210_v0  ;;  %v68_v16 = vld [vmem:[#allocation2 + $0x188] ss:$0 sm:$0xff]  ;;  %vm337_vm2 = vcmp.gt.f32.partialorder %v1344_v31, 0.0  ;;  %s1218_s0 = smov 124   ;;  %vm402_vm4 = vcmp.gt.f32.partialorder %v1344_v31, 1.0  ;;  %vm467_vm6 = vcmp.gt.f32.partialorder %v1344_v31, 2.0 }
  0x24   :  { %1007 = vmatpush3.bf16.msra.mxu1 %v1006_v30  ;;  %v297_v13 = vadd.f32 %v296_v11, %v295_v10  ;;  %vm532_vm8 = vcmp.gt.f32.partialorder %v1344_v31, 3.0  ;;  %vm597_vm10 = vcmp.gt.f32.partialorder %v1344_v31, 4.0  ;;  %vm662_vm12 = vcmp.gt.f32.partialorder %v1344_v31, 5.0 }
  0x25   :  { %1008 = vmatprep.subr.bf16.mxu1 %v1210_v0  ;;  %vm727_vm14 = vcmp.gt.f32.partialorder %v1344_v31, 6.0 }
  0x26   :  { %986 = vmatpush3.bf16.msra.mxu0 %v985_v27 }
  0x27   :  { %987 = vmatprep.subr.bf16.mxu0 %v1210_v0 }
  0x28   :  { %1010 = vmatpush3.bf16.msra.mxu1 %v1009_v36 }
  0x29   :  { %1011 = vmatprep.subr.bf16.mxu1 %v1210_v0 }
  0x2a   :  { %989 = vmatpush3.bf16.msra.mxu0 %v988_v33  ;;  %v338_v33 = vsel %vm337_vm2, 1, %v1215_v32 }
  0x2b   :  { %990 = vmatprep.subr.bf16.mxu0 %v1210_v0 }
  0x2c   :  { %1013 = vmatpush3.bf16.msra.mxu1 %v1012_v44 }
  0x2d   :  { %1014 = vmatprep.subr.bf16.mxu1 %v1210_v0 }
  0x2e   :  { %992 = vmatpush3.bf16.msra.mxu0 %v991_v37 }
  0x2f   :  { %993 = vmatprep.subr.bf16.mxu0 %v1210_v0 }
  0x30   :  { %1016 = vmatpush3.bf16.msra.mxu1 %v1015_v47 }
  0x31   :  { %1017 = vmatprep.subr.bf16.mxu1 %v1210_v0 }
  0x32   :  { %995 = vmatpush3.bf16.msra.mxu0 %v994_v40  ;;  %v1217_v40 = vmov 5  }
  0x33   :  { %1020 = vmatprep.subr.bf16.mxu0 %v1210_v0 }
  0x34   :  { %1019 = vmatpush3.bf16.msra.mxu1 %v1018_v50  ;;  %v1220_v50 = vmov 7  }
  0x35   :  { %916 = vmatmul.mubr.f32.vlgmr.msra.gmra.mrb[0].mxu0 %v25_v41 }
  0x36   :  { %969 = vmatprep.mubr.msk.f32.mxu0 %vm1211_vm0, %v1212_v1  ;;  %1022 = vmatpush3.bf16.msra.mxu0 %v1021_v53  ;;  %v1027_v1 = vpack.c.bf16 %v64_v63, %v63_v62  ;;  %v403_v63 = vsel %vm402_vm4, 1, %v1215_v32  ;;  %vm792_vm0 = vcmp.gt.f32.partialorder %v1344_v31, 7.0 }
  0x37   :  { %1023 = vmatprep.subr.bf16.mxu0 %v1210_v0 }
  0x3a   :  { %1025 = vmatpush3.bf16.msra.mxu0 %v1024_v61 }
  0x3b   :  { %1026 = vmatprep.subr.bf16.mxu0 %v1210_v0 }
  0x3e   :  { %1028 = vmatpush3.bf16.msra.mxu0 %v1027_v1 }
  0x3f   :  { %1029 = vmatprep.subr.bf16.mxu0 %v1210_v0  ;;  %v299_v0 = vmul.f32 0.0, %v1328_v9 }
  0x41   :  { %v300_v14 = vadd.f32 %v299_v0, %v298_v12 }
  0x42   :  { %1031 = vmatpush3.bf16.msra.mxu0 %v1030_v4 }
  0x43   :  { %v301_v15 = vadd.f32 %v300_v14, %v297_v13  ;;  %v1224_v14 = vmov 16  }
  0x45   :  { %303 = vrot.lane.b32.xlu0 %v301_v15, %s1214_s25 }
  0x49   :  { %340 = vperm.xlu0 %1089, %v338_v33  }
  0x4d   :  { %1091 = vset.pattern.permute.xlu0 %v1217_v40 }
  0x93   :  { %v1334_v20 = vpop.permute.xlu0 %314 }
  0x94   :  { %v317_v21 = vadd.f32 %v1334_v20, %v301_v15  ;;  %v1225_v15 = vmov 17  }
  0x96   :  { %319 = vrot.lane.b32.xlu1 %v317_v21, %s1209_s20 }
  0xb7   :  { %v304_v24 = vpop.permute.xlu0 %303 }
  0xc8   :  { %v341_v43 = vpop.permute.xlu0 %340 }
  0xc9   :  { %vm342_vm3 = vcmp.eq.s32.totalorder %v341_v43, 1  ;;  %v468_v43 = vsel %vm467_vm6, 1, %v1215_v32 }
 0x108   :  { %v137_v55 = vpop.f32.mrb[0].mxu0  ;;  %v320_v34 = vpop.permute.xlu1 %319 }
 0x109   :  { %v138_v56 = vadd.f32 %v137_v55, %v67_v54  ;;  %v917_v57 = vpop.f32.mrb[1].mxu0 }
 0x10b   :  { %1129 = vtanh.f32 %v138_v56 }
 0x115   :  { %v1130_v58 = vpop.eup %1129 }
 0x116   :  { %951 = vmatmul.mubr.f32.vlgmr.msra.gmra.mrb[0].mxu1 %v1130_v58 }
 0x1e9   :  { %v208_v17 = vpop.f32.mrb[0].mxu1 }
 0x1ea   :  { %v209_v18 = vadd.f32 %v208_v17, %v68_v16  ;;  %v952_v19 = vpop.f32.mrb[1].mxu1 }
 0x1ec   :  { %1131 = vtanh.f32 %v209_v18 }
 0x1f6   :  { %v1132_v22 = vpop.eup %1131 }
 0x1f7   :  { %970 = vmatmul.mubr.msk.f32.vlgmr.msra.gmra.mrb[2].mxu0 %vm213_vm1, %v1132_v22 }
 0x2ca   :  { %v283_v23 = vpop.f32.mrb[2].mxu0 }
 0x2cb   :  { %v1338_v25 = vadd.f32 %v283_v23, %v69_v5  ;;  %v971_v26 = vpop.f32.mrb[3].mxu0 }
 0x2cd   :  { %v306_v27 = vadd.f32 %v304_v24, %v1338_v25 }
 0x2cf   :  { %v832_v28 = vmul.f32 -1.442695, %v306_v27  ;;  %v1226_v27 = vmov 18  }
 0x2d1   :  { %1133 = vpow2.f32 %v832_v28  ;;  %v1227_v28 = vmov 19  }
 0x2db   :  { %v1134_v29 = vpop.eup %1133 }
 0x2dc   :  { %v310_v30 = vadd.f32 1.0, %v1134_v29 }
 0x2de   :  { %1135 = vrcp.f32 %v310_v30 }
 0x2e8   :  { %v1136_v35 = vpop.eup %1135 }
 0x2e9   :  { %v322_v36 = vmul.f32 %v1136_v35, %v320_v34  ;;  %v329_v42 = vsub.f32 1.0, %v1136_v35  ;;  %v335_v45 = vmul.f32 0.0, %v1136_v35 }
 0x2eb   :  { %324 = vrot.lane.b32.xlu1 %v322_v36, %s1213_s24 }
 0x35d   :  { %v325_v37 = vpop.permute.xlu1 %324 }
 0x35e   :  { %v327_v38 = vadd.f32 %v325_v37, %v1338_v25 }
 0x360   :  { %1137 = vtanh.f32 %v327_v38 }
 0x36a   :  { %v1138_v41 = vpop.eup %1137 }
 0x36b   :  { %331 = vrot.lane.b32.xlu1 %v1138_v41, %s1218_s0 }
 0x3dd   :  { %v332_v44 = vpop.permute.xlu1 %331 }
 0x3de   :  { %v334_v46 = vmul.f32 %v332_v44, %v329_v42 }
 0x3e0   :  { %v336_v47 = vadd.f32 %v335_v45, %v334_v46 }
 0x3e2   :  { %v343_v48 = vsel %vm342_vm3, %v336_v47, 0.0 }
 0x3e3   :  { %351 = vperm.xlu0 %1091, %v343_v48   ;;  %346 = vperm.xlu1 %1090, %v343_v48  }
 0x3e7   :  { %1092 = vset.pattern.permute.xlu1 %v1219_v49  ;;  %1095 = vset.pattern.permute.xlu0 %v1224_v14 }
 0x3e8   :  { %357 = vperm.xlu1 %1092, %v343_v48  }
 0x3ec   :  { %1093 = vset.pattern.permute.xlu1 %v1220_v50 }
 0x3ed   :  { %362 = vperm.xlu1 %1093, %v343_v48  }
 0x3f1   :  { %1094 = vset.pattern.permute.xlu1 %v1215_v32 }
 0x462   :  { %v347_v51 = vpop.permute.xlu1 %346  ;;  %v352_v53 = vpop.permute.xlu0 %351 }
 0x463   :  { %v354_v54 = vmul.f32 %v352_v53, %v1324_v7  ;;  %v349_v55 = vmul.f32 %v347_v51, %v1321_v6 }
 0x465   :  { %v355_v59 = vadd.f32 %v354_v54, %v349_v55  ;;  %v1230_v54 = vmov 28   ;;  %v1231_v55 = vmov 29  }
 0x467   :  { %v358_v52 = vpop.permute.xlu1 %357 }
 0x468   :  { %v360_v57 = vmul.f32 %v358_v52, %v1326_v8 }
 0x46c   :  { %v363_v56 = vpop.permute.xlu1 %362 }
 0x46d   :  { %v365_v58 = vmul.f32 %v363_v56, %v1328_v9 }
 0x46f   :  { %v366_v60 = vadd.f32 %v365_v58, %v360_v57 }
 0x471   :  { %v367_v61 = vadd.f32 %v366_v60, %v355_v59 }
 0x473   :  { %369 = vrot.lane.b32.xlu0 %v367_v61, %s1221_s28  ;;  %v379_v62 = vadd.f32 %v367_v61, %v1334_v20 }
 0x475   :  { %381 = vrot.lane.b32.xlu1 %v379_v62, %s1222_s29 }
 0x479   :  { %405 = vperm.xlu1 %1094, %v403_v63  }
 0x47d   :  { %397 = vrot.lane.b32.xlu1 %v343_v48, %s1223_s30 }
 0x47e   :  { %1096 = vset.pattern.permute.xlu1 %v1225_v15 }
 0x4e5   :  { %v370_v1 = vpop.permute.xlu0 %369 }
 0x4e6   :  { %v372_v2 = vadd.f32 %v370_v1, %v1338_v25 }
 0x4e7   :  { %v382_v11 = vpop.permute.xlu1 %381 }
 0x4e8   :  { %v833_v3 = vmul.f32 -1.442695, %v372_v2  ;;  %v1232_v2 = vmov 30  }
 0x4ea   :  { %1139 = vpow2.f32 %v833_v3  ;;  %v1233_v3 = vmov 31  }
 0x4f4   :  { %v1140_v4 = vpop.eup %1139 }
 0x4f5   :  { %v376_v5 = vadd.f32 1.0, %v1140_v4 }
 0x4f7   :  { %1141 = vrcp.f32 %v376_v5 }
 0x4f8   :  { %v406_v17 = vpop.permute.xlu1 %405 }
 0x4f9   :  { %vm407_vm5 = vcmp.eq.s32.totalorder %v406_v17, 1 }
 0x4fc   :  { %v398_v19 = vpop.permute.xlu1 %397 }
 0x501   :  { %v1142_v10 = vpop.eup %1141 }
 0x502   :  { %v384_v12 = vmul.f32 %v1142_v10, %v382_v11  ;;  %v391_v18 = vsub.f32 1.0, %v1142_v10  ;;  %v400_v22 = vmul.f32 %v1142_v10, %v398_v19 }
 0x504   :  { %386 = vrot.lane.b32.xlu0 %v384_v12, %s1213_s24 }
 0x576   :  { %v387_v0 = vpop.permute.xlu0 %386 }
 0x577   :  { %v389_v13 = vadd.f32 %v387_v0, %v1338_v25 }
 0x579   :  { %1143 = vtanh.f32 %v389_v13 }
 0x583   :  { %v1144_v16 = vpop.eup %1143 }
 0x584   :  { %393 = vrot.lane.b32.xlu0 %v1144_v16, %s1218_s0 }
 0x5f6   :  { %v394_v21 = vpop.permute.xlu0 %393 }
 0x5f7   :  { %v396_v23 = vmul.f32 %v394_v21, %v391_v18 }
 0x5f9   :  { %v401_v24 = vadd.f32 %v400_v22, %v396_v23 }
 0x5fb   :  { %v408_v26 = vsel %vm407_vm5, %v401_v24, %v398_v19  ;;  %v533_v19 = vsel %vm532_vm8, 1, %v1215_v32 }
 0x5fc   :  { %416 = vperm.xlu1 %1096, %v408_v26   ;;  %411 = vperm.xlu0 %1095, %v408_v26  }
 0x600   :  { %1097 = vset.pattern.permute.xlu1 %v1226_v27  ;;  %1098 = vset.pattern.permute.xlu0 %v1227_v28 }
 0x601   :  { %422 = vperm.xlu1 %1097, %v408_v26   ;;  %427 = vperm.xlu0 %1098, %v408_v26  }
 0x605   :  { %1099 = vset.pattern.permute.xlu1 %v1215_v32  ;;  %1100 = vset.pattern.permute.xlu0 %v1230_v54 }
 0x67b   :  { %v417_v29 = vpop.permute.xlu1 %416  ;;  %v412_v30 = vpop.permute.xlu0 %411 }
 0x67c   :  { %v419_v33 = vmul.f32 %v417_v29, %v1324_v7  ;;  %v414_v34 = vmul.f32 %v412_v30, %v1321_v6 }
 0x67e   :  { %v420_v39 = vadd.f32 %v419_v33, %v414_v34  ;;  %v1236_v34 = vmov 40  }
 0x680   :  { %v423_v35 = vpop.permute.xlu1 %422  ;;  %v428_v36 = vpop.permute.xlu0 %427 }
 0x681   :  { %v425_v37 = vmul.f32 %v423_v35, %v1326_v8  ;;  %v430_v38 = vmul.f32 %v428_v36, %v1328_v9  ;;  %v1237_v35 = vmov 41  }
 0x683   :  { %v431_v40 = vadd.f32 %v430_v38, %v425_v37 }
 0x685   :  { %v432_v41 = vadd.f32 %v431_v40, %v420_v39 }
 0x687   :  { %434 = vrot.lane.b32.xlu1 %v432_v41, %s1228_s3  ;;  %v444_v42 = vadd.f32 %v432_v41, %v1334_v20 }
 0x68b   :  { %446 = vrot.lane.b32.xlu1 %v444_v42, %s1229_s4 }
 0x68f   :  { %470 = vperm.xlu1 %1099, %v468_v43  }
 0x693   :  { %462 = vrot.lane.b32.xlu1 %v408_v26, %s1223_s30 }
 0x694   :  { %1101 = vset.pattern.permute.xlu1 %v1231_v55 }
 0x6f9   :  { %v435_v44 = vpop.permute.xlu1 %434 }
 0x6fa   :  { %v437_v45 = vadd.f32 %v435_v44, %v1338_v25 }
 0x6fc   :  { %v834_v46 = vmul.f32 -1.442695, %v437_v45  ;;  %v1238_v45 = vmov 42  }
 0x6fd   :  { %v447_v50 = vpop.permute.xlu1 %446 }
 0x6fe   :  { %1145 = vpow2.f32 %v834_v46  ;;  %v1239_v46 = vmov 43  }
 0x708   :  { %v1146_v47 = vpop.eup %1145 }
 0x709   :  { %v441_v48 = vadd.f32 1.0, %v1146_v47 }
 0x70b   :  { %1147 = vrcp.f32 %v441_v48 }
 0x70e   :  { %v471_v57 = vpop.permute.xlu1 %470 }
 0x70f   :  { %vm472_vm7 = vcmp.eq.s32.totalorder %v471_v57, 1 }
 0x712   :  { %v463_v59 = vpop.permute.xlu1 %462 }
 0x715   :  { %v1148_v49 = vpop.eup %1147 }
 0x716   :  { %v449_v51 = vmul.f32 %v1148_v49, %v447_v50  ;;  %v456_v58 = vsub.f32 1.0, %v1148_v49  ;;  %v465_v61 = vmul.f32 %v1148_v49, %v463_v59 }
 0x718   :  { %451 = vrot.lane.b32.xlu0 %v449_v51, %s1213_s24 }
 0x78a   :  { %v452_v52 = vpop.permute.xlu0 %451 }
 0x78b   :  { %v454_v53 = vadd.f32 %v452_v52, %v1338_v25 }
 0x78d   :  { %1149 = vtanh.f32 %v454_v53 }
 0x797   :  { %v1150_v56 = vpop.eup %1149 }
 0x798   :  { %458 = vrot.lane.b32.xlu0 %v1150_v56, %s1218_s0 }
 0x80a   :  { %v459_v60 = vpop.permute.xlu0 %458 }
 0x80b   :  { %v461_v62 = vmul.f32 %v459_v60, %v456_v58 }
 0x80d   :  { %v466_v63 = vadd.f32 %v465_v61, %v461_v62 }
 0x80f   :  { %v473_v1 = vsel %vm472_vm7, %v466_v63, %v463_v59  ;;  %v598_v59 = vsel %vm597_vm10, 1, %v1215_v32 }
 0x810   :  { %481 = vperm.xlu1 %1101, %v473_v1   ;;  %476 = vperm.xlu0 %1100, %v473_v1  }
 0x814   :  { %1102 = vset.pattern.permute.xlu1 %v1232_v2  ;;  %1103 = vset.pattern.permute.xlu0 %v1233_v3 }
 0x815   :  { %487 = vperm.xlu1 %1102, %v473_v1   ;;  %492 = vperm.xlu0 %1103, %v473_v1  }
 0x819   :  { %1104 = vset.pattern.permute.xlu1 %v1215_v32  ;;  %1105 = vset.pattern.permute.xlu0 %v1236_v34 }
 0x88f   :  { %v482_v4 = vpop.permute.xlu1 %481  ;;  %v477_v5 = vpop.permute.xlu0 %476 }
 0x890   :  { %v484_v10 = vmul.f32 %v482_v4, %v1324_v7  ;;  %v479_v11 = vmul.f32 %v477_v5, %v1321_v6 }
 0x892   :  { %v485_v15 = vadd.f32 %v484_v10, %v479_v11  ;;  %v1242_v11 = vmov 52  }
 0x894   :  { %v488_v12 = vpop.permute.xlu1 %487  ;;  %v493_v0 = vpop.permute.xlu0 %492 }
 0x895   :  { %v490_v13 = vmul.f32 %v488_v12, %v1326_v8  ;;  %v495_v14 = vmul.f32 %v493_v0, %v1328_v9  ;;  %v1243_v12 = vmov 53  }
 0x897   :  { %v496_v16 = vadd.f32 %v495_v14, %v490_v13 }
 0x899   :  { %v497_v17 = vadd.f32 %v496_v16, %v485_v15 }
 0x89b   :  { %499 = vrot.lane.b32.xlu1 %v497_v17, %s1234_s5  ;;  %v509_v18 = vadd.f32 %v497_v17, %v1334_v20 }
 0x89f   :  { %511 = vrot.lane.b32.xlu1 %v509_v18, %s1235_s6 }
 0x8a3   :  { %535 = vperm.xlu1 %1104, %v533_v19  }
 0x8a7   :  { %527 = vrot.lane.b32.xlu1 %v473_v1, %s1223_s30 }
 0x8a8   :  { %1106 = vset.pattern.permute.xlu1 %v1237_v35 }
 0x90d   :  { %v500_v21 = vpop.permute.xlu1 %499 }
 0x90e   :  { %v502_v22 = vadd.f32 %v500_v21, %v1338_v25 }
 0x910   :  { %v835_v23 = vmul.f32 -1.442695, %v502_v22  ;;  %v1244_v22 = vmov 54  }
 0x911   :  { %v512_v28 = vpop.permute.xlu1 %511 }
 0x912   :  { %1151 = vpow2.f32 %v835_v23  ;;  %v1245_v23 = vmov 55  }
 0x91c   :  { %v1152_v24 = vpop.eup %1151 }
 0x91d   :  { %v506_v26 = vadd.f32 1.0, %v1152_v24 }
 0x91f   :  { %1153 = vrcp.f32 %v506_v26 }
 0x922   :  { %v536_v37 = vpop.permute.xlu1 %535 }
 0x923   :  { %vm537_vm9 = vcmp.eq.s32.totalorder %v536_v37, 1 }
 0x926   :  { %v528_v39 = vpop.permute.xlu1 %527 }
 0x929   :  { %v1154_v27 = vpop.eup %1153 }
 0x92a   :  { %v514_v29 = vmul.f32 %v1154_v27, %v512_v28  ;;  %v521_v38 = vsub.f32 1.0, %v1154_v27  ;;  %v530_v41 = vmul.f32 %v1154_v27, %v528_v39 }
 0x92c   :  { %516 = vrot.lane.b32.xlu0 %v514_v29, %s1213_s24 }
 0x99e   :  { %v517_v30 = vpop.permute.xlu0 %516 }
 0x99f   :  { %v519_v33 = vadd.f32 %v517_v30, %v1338_v25 }
 0x9a1   :  { %1155 = vtanh.f32 %v519_v33 }
 0x9ab   :  { %v1156_v36 = vpop.eup %1155 }
 0x9ac   :  { %523 = vrot.lane.b32.xlu0 %v1156_v36, %s1218_s0 }
 0xa1e   :  { %v524_v40 = vpop.permute.xlu0 %523 }
 0xa1f   :  { %v526_v42 = vmul.f32 %v524_v40, %v521_v38 }
 0xa21   :  { %v531_v43 = vadd.f32 %v530_v41, %v526_v42 }
 0xa23   :  { %v538_v44 = vsel %vm537_vm9, %v531_v43, %v528_v39  ;;  %v663_v39 = vsel %vm662_vm12, 1, %v1215_v32 }
 0xa24   :  { %546 = vperm.xlu1 %1106, %v538_v44   ;;  %541 = vperm.xlu0 %1105, %v538_v44  }
 0xa28   :  { %1107 = vset.pattern.permute.xlu1 %v1238_v45  ;;  %1108 = vset.pattern.permute.xlu0 %v1239_v46 }
 0xa29   :  { %552 = vperm.xlu1 %1107, %v538_v44   ;;  %557 = vperm.xlu0 %1108, %v538_v44  }
 0xa2d   :  { %1109 = vset.pattern.permute.xlu1 %v1215_v32  ;;  %1110 = vset.pattern.permute.xlu0 %v1242_v11 }
 0xaa3   :  { %v547_v47 = vpop.permute.xlu1 %546  ;;  %v542_v48 = vpop.permute.xlu0 %541 }
 0xaa4   :  { %v549_v49 = vmul.f32 %v547_v47, %v1324_v7  ;;  %v544_v50 = vmul.f32 %v542_v48, %v1321_v6 }
 0xaa6   :  { %v550_v55 = vadd.f32 %v549_v49, %v544_v50  ;;  %v1248_v50 = vmov 64  }
 0xaa8   :  { %v553_v51 = vpop.permute.xlu1 %552  ;;  %v558_v52 = vpop.permute.xlu0 %557 }
 0xaa9   :  { %v555_v53 = vmul.f32 %v553_v51, %v1326_v8  ;;  %v560_v54 = vmul.f32 %v558_v52, %v1328_v9  ;;  %v1249_v51 = vmov 65  }
 0xaab   :  { %v561_v56 = vadd.f32 %v560_v54, %v555_v53 }
 0xaad   :  { %v562_v57 = vadd.f32 %v561_v56, %v550_v55 }
 0xaaf   :  { %564 = vrot.lane.b32.xlu1 %v562_v57, %s1240_s7  ;;  %v574_v58 = vadd.f32 %v562_v57, %v1334_v20 }
 0xab3   :  { %576 = vrot.lane.b32.xlu1 %v574_v58, %s1241_s8 }
 0xab7   :  { %600 = vperm.xlu1 %1109, %v598_v59  }
 0xabb   :  { %592 = vrot.lane.b32.xlu1 %v538_v44, %s1223_s30 }
 0xabc   :  { %1111 = vset.pattern.permute.xlu1 %v1243_v12 }
 0xb21   :  { %v565_v60 = vpop.permute.xlu1 %564 }
 0xb22   :  { %v567_v61 = vadd.f32 %v565_v60, %v1338_v25 }
 0xb24   :  { %v836_v62 = vmul.f32 -1.442695, %v567_v61  ;;  %v1250_v61 = vmov 66  }
 0xb25   :  { %v577_v3 = vpop.permute.xlu1 %576 }
 0xb26   :  { %1157 = vpow2.f32 %v836_v62  ;;  %v1251_v62 = vmov 67  }
 0xb30   :  { %v1158_v63 = vpop.eup %1157 }
 0xb31   :  { %v571_v1 = vadd.f32 1.0, %v1158_v63 }
 0xb33   :  { %1159 = vrcp.f32 %v571_v1 }
 0xb36   :  { %v601_v13 = vpop.permute.xlu1 %600 }
 0xb37   :  { %vm602_vm11 = vcmp.eq.s32.totalorder %v601_v13, 1 }
 0xb3a   :  { %v593_v15 = vpop.permute.xlu1 %592 }
 0xb3d   :  { %v1160_v2 = vpop.eup %1159 }
 0xb3e   :  { %v579_v4 = vmul.f32 %v1160_v2, %v577_v3  ;;  %v586_v14 = vsub.f32 1.0, %v1160_v2  ;;  %v595_v17 = vmul.f32 %v1160_v2, %v593_v15 }
 0xb40   :  { %581 = vrot.lane.b32.xlu0 %v579_v4, %s1213_s24 }
 0xbb2   :  { %v582_v5 = vpop.permute.xlu0 %581 }
 0xbb3   :  { %v584_v10 = vadd.f32 %v582_v5, %v1338_v25 }
 0xbb5   :  { %1161 = vtanh.f32 %v584_v10 }
 0xbbf   :  { %v1162_v0 = vpop.eup %1161 }
 0xbc0   :  { %588 = vrot.lane.b32.xlu0 %v1162_v0, %s1218_s0 }
 0xc32   :  { %v589_v16 = vpop.permute.xlu0 %588 }
 0xc33   :  { %v591_v18 = vmul.f32 %v589_v16, %v586_v14 }
 0xc35   :  { %v596_v19 = vadd.f32 %v595_v17, %v591_v18 }
 0xc37   :  { %v603_v21 = vsel %vm602_vm11, %v596_v19, %v593_v15  ;;  %v728_v15 = vsel %vm727_vm14, 1, %v1215_v32 }
 0xc38   :  { %611 = vperm.xlu1 %1111, %v603_v21   ;;  %606 = vperm.xlu0 %1110, %v603_v21  }
 0xc3c   :  { %1112 = vset.pattern.permute.xlu1 %v1244_v22  ;;  %1113 = vset.pattern.permute.xlu0 %v1245_v23 }
 0xc3d   :  { %617 = vperm.xlu1 %1112, %v603_v21   ;;  %622 = vperm.xlu0 %1113, %v603_v21  }
 0xc41   :  { %1114 = vset.pattern.permute.xlu1 %v1215_v32  ;;  %1115 = vset.pattern.permute.xlu0 %v1248_v50 }
 0xcb7   :  { %v612_v24 = vpop.permute.xlu1 %611  ;;  %v607_v26 = vpop.permute.xlu0 %606 }
 0xcb8   :  { %v614_v27 = vmul.f32 %v612_v24, %v1324_v7  ;;  %v609_v28 = vmul.f32 %v607_v26, %v1321_v6 }
 0xcba   :  { %v615_v35 = vadd.f32 %v614_v27, %v609_v28  ;;  %v1254_v28 = vmov 76  }
 0xcbc   :  { %v618_v29 = vpop.permute.xlu1 %617  ;;  %v623_v30 = vpop.permute.xlu0 %622 }
 0xcbd   :  { %v620_v33 = vmul.f32 %v618_v29, %v1326_v8  ;;  %v625_v34 = vmul.f32 %v623_v30, %v1328_v9  ;;  %v1255_v29 = vmov 77  }
 0xcbf   :  { %v626_v36 = vadd.f32 %v625_v34, %v620_v33 }
 0xcc1   :  { %v627_v37 = vadd.f32 %v626_v36, %v615_v35 }
 0xcc3   :  { %629 = vrot.lane.b32.xlu1 %v627_v37, %s1246_s9  ;;  %v639_v38 = vadd.f32 %v627_v37, %v1334_v20 }
 0xcc7   :  { %641 = vrot.lane.b32.xlu1 %v639_v38, %s1247_s10 }
 0xccb   :  { %665 = vperm.xlu1 %1114, %v663_v39  }
 0xccf   :  { %657 = vrot.lane.b32.xlu1 %v603_v21, %s1223_s30 }
 0xcd0   :  { %1116 = vset.pattern.permute.xlu1 %v1249_v51 }
 0xd35   :  { %v630_v40 = vpop.permute.xlu1 %629 }
 0xd36   :  { %v632_v41 = vadd.f32 %v630_v40, %v1338_v25 }
 0xd38   :  { %v837_v42 = vmul.f32 -1.442695, %v632_v41  ;;  %v1256_v41 = vmov 78  }
 0xd39   :  { %v642_v46 = vpop.permute.xlu1 %641 }
 0xd3a   :  { %1163 = vpow2.f32 %v837_v42  ;;  %v1257_v42 = vmov 79  }
 0xd44   :  { %v1164_v43 = vpop.eup %1163 }
 0xd45   :  { %v636_v44 = vadd.f32 1.0, %v1164_v43 }
 0xd47   :  { %1165 = vrcp.f32 %v636_v44 }
 0xd4a   :  { %v666_v53 = vpop.permute.xlu1 %665 }
 0xd4b   :  { %vm667_vm13 = vcmp.eq.s32.totalorder %v666_v53, 1 }
 0xd4e   :  { %v658_v55 = vpop.permute.xlu1 %657 }
 0xd51   :  { %v1166_v45 = vpop.eup %1165 }
 0xd52   :  { %v644_v47 = vmul.f32 %v1166_v45, %v642_v46  ;;  %v651_v54 = vsub.f32 1.0, %v1166_v45  ;;  %v660_v57 = vmul.f32 %v1166_v45, %v658_v55 }
 0xd54   :  { %646 = vrot.lane.b32.xlu0 %v644_v47, %s1213_s24 }
 0xdc6   :  { %v647_v48 = vpop.permute.xlu0 %646 }
 0xdc7   :  { %v649_v49 = vadd.f32 %v647_v48, %v1338_v25 }
 0xdc9   :  { %1167 = vtanh.f32 %v649_v49 }
 0xdd3   :  { %v1168_v52 = vpop.eup %1167 }
 0xdd4   :  { %653 = vrot.lane.b32.xlu0 %v1168_v52, %s1218_s0 }
 0xe46   :  { %v654_v56 = vpop.permute.xlu0 %653 }
 0xe47   :  { %v656_v58 = vmul.f32 %v654_v56, %v651_v54 }
 0xe49   :  { %v661_v59 = vadd.f32 %v660_v57, %v656_v58 }
 0xe4b   :  { %v668_v60 = vsel %vm667_vm13, %v661_v59, %v658_v55 }
 0xe4c   :  { %676 = vperm.xlu1 %1116, %v668_v60   ;;  %671 = vperm.xlu0 %1115, %v668_v60  }
 0xe50   :  { %1117 = vset.pattern.permute.xlu1 %v1250_v61  ;;  %1118 = vset.pattern.permute.xlu0 %v1251_v62 }
 0xe51   :  { %682 = vperm.xlu1 %1117, %v668_v60   ;;  %687 = vperm.xlu0 %1118, %v668_v60  }
 0xe55   :  { %1119 = vset.pattern.permute.xlu1 %v1215_v32  ;;  %1120 = vset.pattern.permute.xlu0 %v1254_v28 }
 0xecb   :  { %v677_v63 = vpop.permute.xlu1 %676  ;;  %v672_v1 = vpop.permute.xlu0 %671 }
 0xecc   :  { %v679_v2 = vmul.f32 %v677_v63, %v1324_v7  ;;  %v674_v3 = vmul.f32 %v672_v1, %v1321_v6 }
 0xece   :  { %v680_v12 = vadd.f32 %v679_v2, %v674_v3 }
 0xed0   :  { %v683_v4 = vpop.permute.xlu1 %682  ;;  %v688_v5 = vpop.permute.xlu0 %687 }
 0xed1   :  { %v685_v10 = vmul.f32 %v683_v4, %v1326_v8  ;;  %v690_v11 = vmul.f32 %v688_v5, %v1328_v9 }
 0xed3   :  { %v691_v0 = vadd.f32 %v690_v11, %v685_v10  ;;  %v1263_v11 = vmov 91  }
 0xed5   :  { %v692_v13 = vadd.f32 %v691_v0, %v680_v12 }
 0xed7   :  { %694 = vrot.lane.b32.xlu1 %v692_v13, %s1252_s11  ;;  %v704_v14 = vadd.f32 %v692_v13, %v1334_v20  ;;  %v292_v13 = vld [vmem:[#allocation2 + $0xd1] ss:$0 sm:$0xff] }
 0xedb   :  { %706 = vrot.lane.b32.xlu1 %v704_v14, %s1253_s12  ;;  %v291_v14 = vld [vmem:[#allocation2 + $0xd0] ss:$0 sm:$0xff] }
 0xedf   :  { %730 = vperm.xlu1 %1119, %v728_v15   ;;  %v293_v15 = vld [vmem:[#allocation2 + $0xd2] ss:$0 sm:$0xff] }
 0xee3   :  { %722 = vrot.lane.b32.xlu1 %v668_v60, %s1223_s30  ;;  %v1261_v60 = vmov 89  }
 0xee4   :  { %1121 = vset.pattern.permute.xlu1 %v1255_v29 }
 0xf49   :  { %v695_v16 = vpop.permute.xlu1 %694 }
 0xf4a   :  { %v697_v17 = vadd.f32 %v695_v16, %v1338_v25  ;;  %v294_v16 = vld [vmem:[#allocation2 + $0xd3] ss:$0 sm:$0xff] }
 0xf4c   :  { %v838_v18 = vmul.f32 -1.442695, %v697_v17 }
 0xf4d   :  { %v707_v23 = vpop.permute.xlu1 %706 }
 0xf4e   :  { %1169 = vpow2.f32 %v838_v18 }
 0xf58   :  { %v1170_v19 = vpop.eup %1169 }
 0xf59   :  { %v701_v21 = vadd.f32 1.0, %v1170_v19 }
 0xf5b   :  { %1171 = vrcp.f32 %v701_v21 }
 0xf5e   :  { %v731_v33 = vpop.permute.xlu1 %730 }
 0xf5f   :  { %vm732_vm15 = vcmp.eq.s32.totalorder %v731_v33, 1 }
 0xf62   :  { %v723_v35 = vpop.permute.xlu1 %722 }
 0xf65   :  { %v1172_v22 = vpop.eup %1171 }
 0xf66   :  { %v709_v24 = vmul.f32 %v1172_v22, %v707_v23  ;;  %v716_v34 = vsub.f32 1.0, %v1172_v22  ;;  %v725_v37 = vmul.f32 %v1172_v22, %v723_v35 }
 0xf68   :  { %711 = vrot.lane.b32.xlu0 %v709_v24, %s1213_s24 }
 0xfda   :  { %v712_v26 = vpop.permute.xlu0 %711 }
 0xfdb   :  { %v714_v27 = vadd.f32 %v712_v26, %v1338_v25 }
 0xfdd   :  { %1173 = vtanh.f32 %v714_v27  ;;  %v70_v27 = vld [vmem:[#allocation2 + $0x191] ss:$0 sm:$0xff] }
 0xfe7   :  { %v1174_v30 = vpop.eup %1173 }
 0xfe8   :  { %718 = vrot.lane.b32.xlu0 %v1174_v30, %s1218_s0 }
0x105a   :  { %v719_v36 = vpop.permute.xlu0 %718 }
0x105b   :  { %v721_v38 = vmul.f32 %v719_v36, %v716_v34 }
0x105d   :  { %v726_v39 = vadd.f32 %v725_v37, %v721_v38 }
0x105f   :  { %v733_v40 = vsel %vm732_vm15, %v726_v39, %v723_v35 }
0x1060   :  { %741 = vperm.xlu1 %1121, %v733_v40   ;;  %736 = vperm.xlu0 %1120, %v733_v40  }
0x1064   :  { %1122 = vset.pattern.permute.xlu1 %v1256_v41  ;;  %1123 = vset.pattern.permute.xlu0 %v1257_v42 }
0x1065   :  { %747 = vperm.xlu1 %1122, %v733_v40   ;;  %752 = vperm.xlu0 %1123, %v733_v40  }
0x1069   :  { %1124 = vset.pattern.permute.xlu1 %v1215_v32 }
0x10df   :  { %v742_v43 = vpop.permute.xlu1 %741  ;;  %v737_v44 = vpop.permute.xlu0 %736 }
0x10e0   :  { %v744_v45 = vmul.f32 %v742_v43, %v1324_v7  ;;  %v739_v46 = vmul.f32 %v737_v44, %v1321_v6  ;;  %v793_v7 = vsel %vm792_vm0, 1, %v1215_v32  ;;  %v1260_v32 = vmov 88  }
0x10e1   :  { %1125 = vset.pattern.permute.xlu0 %v1260_v32 }
0x10e2   :  { %v745_v51 = vadd.f32 %v744_v45, %v739_v46 }
0x10e4   :  { %v748_v47 = vpop.permute.xlu1 %747  ;;  %v753_v48 = vpop.permute.xlu0 %752 }
0x10e5   :  { %v750_v49 = vmul.f32 %v748_v47, %v1326_v8  ;;  %v755_v50 = vmul.f32 %v753_v48, %v1328_v9 }
0x10e7   :  { %v756_v52 = vadd.f32 %v755_v50, %v750_v49 }
0x10e9   :  { %v757_v53 = vadd.f32 %v756_v52, %v745_v51 }
0x10eb   :  { %759 = vrot.lane.b32.xlu1 %v757_v53, %s1258_s13  ;;  %v769_v54 = vadd.f32 %v757_v53, %v1334_v20 }
0x10ef   :  { %771 = vrot.lane.b32.xlu1 %v769_v54, %s1259_s14 }
0x10f3   :  { %795 = vperm.xlu1 %1124, %v793_v7  }
0x10f7   :  { %787 = vrot.lane.b32.xlu1 %v733_v40, %s1223_s30 }
0x10f8   :  { %1126 = vset.pattern.permute.xlu1 %v1261_v60 }
0x115d   :  { %v760_v6 = vpop.permute.xlu1 %759 }
0x115e   :  { %v762_v8 = vadd.f32 %v760_v6, %v1338_v25 }
0x1160   :  { %v839_v9 = vmul.f32 -1.442695, %v762_v8 }
0x1161   :  { %v772_v58 = vpop.permute.xlu1 %771 }
0x1162   :  { %1175 = vpow2.f32 %v839_v9 }
0x116c   :  { %v1176_v55 = vpop.eup %1175 }
0x116d   :  { %v766_v56 = vadd.f32 1.0, %v1176_v55 }
0x116f   :  { %1177 = vrcp.f32 %v766_v56 }
0x1172   :  { %v796_v62 = vpop.permute.xlu1 %795 }
0x1173   :  { %vm797_vm1 = vcmp.eq.s32.totalorder %v796_v62, 1 }
0x1176   :  { %v788_v1 = vpop.permute.xlu1 %787 }
0x1179   :  { %v1178_v57 = vpop.eup %1177 }
0x117a   :  { %v774_v20 = vmul.f32 %v1178_v57, %v772_v58  ;;  %v781_v63 = vsub.f32 1.0, %v1178_v57  ;;  %v790_v3 = vmul.f32 %v1178_v57, %v788_v1 }
0x117c   :  { %776 = vrot.lane.b32.xlu0 %v774_v20, %s1213_s24 }
0x11ee   :  { %v777_v31 = vpop.permute.xlu0 %776 }
0x11ef   :  { %v779_v59 = vadd.f32 %v777_v31, %v1338_v25  ;;  %v1262_v25 = vmov 90  }
0x11f1   :  { %1179 = vtanh.f32 %v779_v59 }
0x11fb   :  { %v1180_v61 = vpop.eup %1179 }
0x11fc   :  { %783 = vrot.lane.b32.xlu0 %v1180_v61, %s1218_s0 }
0x126e   :  { %v784_v2 = vpop.permute.xlu0 %783 }
0x126f   :  { %v786_v4 = vmul.f32 %v784_v2, %v781_v63 }
0x1271   :  { %v791_v5 = vadd.f32 %v790_v3, %v786_v4 }
0x1273   :  { %v798_v10 = vsel %vm797_vm1, %v791_v5, %v788_v1 }
0x1274   :  { %806 = vperm.xlu1 %1126, %v798_v10   ;;  %801 = vperm.xlu0 %1125, %v798_v10  }
0x1278   :  { %1127 = vset.pattern.permute.xlu1 %v1262_v25  ;;  %1128 = vset.pattern.permute.xlu0 %v1263_v11 }
0x1279   :  { %812 = vperm.xlu1 %1127, %v798_v10   ;;  %817 = vperm.xlu0 %1128, %v798_v10  }
0x12f3   :  { %v807_v12 = vpop.permute.xlu1 %806  ;;  %v802_v0 = vpop.permute.xlu0 %801 }
0x12f4   :  { %v809_v17 = vmul.f32 %v807_v12, %v292_v13  ;;  %v804_v18 = vmul.f32 %v802_v0, %v291_v14 }
0x12f6   :  { %v810_v24 = vadd.f32 %v809_v17, %v804_v18 }
0x12f8   :  { %v813_v19 = vpop.permute.xlu1 %812  ;;  %v818_v21 = vpop.permute.xlu0 %817 }
0x12f9   :  { %v815_v22 = vmul.f32 %v813_v19, %v293_v15  ;;  %v820_v23 = vmul.f32 %v818_v21, %v294_v16 }
0x12fb   :  { %v821_v26 = vadd.f32 %v820_v23, %v815_v22 }
0x12fd   :  { %v822_v28 = vadd.f32 %v821_v26, %v810_v24 }
0x12ff   :  { %v823_v29 = vadd.f32 %v822_v28, %v70_v27 }
0x1301   :  { %1181 = vtanh.f32 %v823_v29 }
0x130b   :  { %v1182_v30 = vpop.eup %1181 }
0x130c   :  { %825 = vst [vmem:[%s1448_s2] sm:$0xff] %v1182_v30 }
0x130d   :  { %830 = vsyncpa [#allocation3], 1 }

</bundles_post_ra>
